<compile_context>
chip_gen: v5e
topology: v5e:2x2
jax: 0.10.0
libtpu: 0.0.40
codegen_flags: <defaults>
</compile_context>

<pallas_src>
import jax
import jax.numpy as jnp
from jax.experimental import pallas as pl
from jax.experimental.pallas import tpu as pltpu


def _round_up(x, m):
    return (x + m - 1) // m * m


# ----------------------------- Pallas kernels ------------------------------

def _make_pool_conv_kernel(Hs, Ws, Cin, CP):
    """Fused: maxpool2x2 -> conv3x3(pad=1) -> bias -> ReLU -> BN partial stats."""
    M = Hs * Ws

    def kernel(x_ref, w_ref, b_ref, o_ref, st_ref, pad_ref):
        # 2x2 max-pool: the four window phases were folded into the lane axis.
        xb = x_ref[0]                                        # (Hs, Ws, 4*Cin)
        pooled = jnp.maximum(
            jnp.maximum(xb[:, :, 0 * Cin:1 * Cin], xb[:, :, 1 * Cin:2 * Cin]),
            jnp.maximum(xb[:, :, 2 * Cin:3 * Cin], xb[:, :, 3 * Cin:4 * Cin]))
        # Zero-padded tile in VMEM scratch (conv padding=1), no HBM traffic.
        pad_ref[...] = jnp.zeros_like(pad_ref)
        pad_ref[1:Hs + 1, 1:Ws + 1, :] = pooled
        # Conv3x3 as 9 shifted MXU matmuls into an f32 accumulator.
        acc = jnp.zeros((M, CP), jnp.float32)
        for dh in range(3):
            for dw in range(3):
                tap = pad_ref[dh:dh + Hs, dw:dw + Ws, :].reshape(M, Cin)
                acc = acc + jnp.dot(tap, w_ref[dh * 3 + dw],
                                    preferred_element_type=jnp.float32)
        y = jnp.maximum(acc + b_ref[...], 0.0)               # bias + ReLU
        o_ref[0] = y.reshape(Hs, Ws, CP)                     # lane-dense store
        # Per-image BatchNorm partial statistics (sum, sum of squares).
        st_ref[0, 0:1, :] = jnp.sum(y, axis=0, keepdims=True)
        st_ref[0, 1:2, :] = jnp.sum(y * y, axis=0, keepdims=True)

    return kernel


def _make_affine_conv_kernel(Hs, Ws, CP):
    """Fused: BN1 affine -> conv3x3(pad=1) -> bias -> ReLU -> BN partial stats."""
    M = Hs * Ws

    def kernel(x_ref, scale_ref, shift_ref, w_ref, b_ref, o_ref, st_ref, pad_ref):
        # Previous layer's BatchNorm applied per-channel, fused into this conv.
        t = x_ref[0] * scale_ref[...] + shift_ref[...]       # (Hs, Ws, CP)
        pad_ref[...] = jnp.zeros_like(pad_ref)
        pad_ref[1:Hs + 1, 1:Ws + 1, :] = t                   # zero conv padding
        acc = jnp.zeros((M, CP), jnp.float32)
        for dh in range(3):
            for dw in range(3):
                tap = pad_ref[dh:dh + Hs, dw:dw + Ws, :].reshape(M, CP)
                acc = acc + jnp.dot(tap, w_ref[dh * 3 + dw],
                                    preferred_element_type=jnp.float32)
        y = jnp.maximum(acc + b_ref[...], 0.0)
        o_ref[0] = y                                         # (M, CP) lane-dense
        st_ref[0, 0:1, :] = jnp.sum(y, axis=0, keepdims=True)
        st_ref[0, 1:2, :] = jnp.sum(y * y, axis=0, keepdims=True)

    return kernel


def _affine_kernel(x_ref, scale_ref, shift_ref, o_ref):
    """Final BatchNorm affine, lane-dense (last dim = CP = 128)."""
    o_ref[...] = x_ref[...] * scale_ref[...] + shift_ref[...]


# ------------------------------ kernel wrappers -----------------------------

def _pool_conv1(xph, w1p, b1p, Hs, Ws, Cin, CP):
    N = xph.shape[0]
    M = Hs * Ws
    flops = 2 * N * M * 9 * Cin * CP
    bytes_accessed = 4 * (xph.size + w1p.size + b1p.size + N * M * CP + N * 2 * CP)
    return pl.pallas_call(
        _make_pool_conv_kernel(Hs, Ws, Cin, CP),
        out_shape=(jax.ShapeDtypeStruct((N, Hs, Ws, CP), jnp.float32),
                   jax.ShapeDtypeStruct((N, 2, CP), jnp.float32)),
        grid=(N,),
        in_specs=[
            pl.BlockSpec((1, Hs, Ws, 4 * Cin), lambda n: (n, 0, 0, 0)),
            pl.BlockSpec((9, Cin, CP), lambda n: (0, 0, 0)),
            pl.BlockSpec((1, CP), lambda n: (0, 0)),
        ],
        out_specs=[
            pl.BlockSpec((1, Hs, Ws, CP), lambda n: (n, 0, 0, 0)),
            pl.BlockSpec((1, 2, CP), lambda n: (n, 0, 0)),
        ],
        scratch_shapes=[pltpu.VMEM((Hs + 2, Ws + 2, Cin), jnp.float32)],
        compiler_params=pltpu.CompilerParams(dimension_semantics=("parallel",)),
        cost_estimate=pl.CostEstimate(flops=flops, transcendentals=0,
                                      bytes_accessed=bytes_accessed),
    )(xph, w1p, b1p)


def _bn_conv2(act1, scale1, shift1, w2p, b2p, Hs, Ws, CP):
    N = act1.shape[0]
    M = Hs * Ws
    flops = 2 * N * M * 9 * CP * CP
    bytes_accessed = 4 * (act1.size + w2p.size + b2p.size + 2 * CP
                          + N * M * CP + N * 2 * CP)
    return pl.pallas_call(
        _make_affine_conv_kernel(Hs, Ws, CP),
        out_shape=(jax.ShapeDtypeStruct((N, M, CP), jnp.float32),
                   jax.ShapeDtypeStruct((N, 2, CP), jnp.float32)),
        grid=(N,),
        in_specs=[
            pl.BlockSpec((1, Hs, Ws, CP), lambda n: (n, 0, 0, 0)),
            pl.BlockSpec((1, CP), lambda n: (0, 0)),
            pl.BlockSpec((1, CP), lambda n: (0, 0)),
            pl.BlockSpec((9, CP, CP), lambda n: (0, 0, 0)),
            pl.BlockSpec((1, CP), lambda n: (0, 0)),
        ],
        out_specs=[
            pl.BlockSpec((1, M, CP), lambda n: (n, 0, 0)),
            pl.BlockSpec((1, 2, CP), lambda n: (n, 0, 0)),
        ],
        scratch_shapes=[pltpu.VMEM((Hs + 2, Ws + 2, CP), jnp.float32)],
        compiler_params=pltpu.CompilerParams(dimension_semantics=("parallel",)),
        cost_estimate=pl.CostEstimate(flops=flops, transcendentals=0,
                                      bytes_accessed=bytes_accessed),
    )(act1, scale1, shift1, w2p, b2p)


def _bn_affine(act2, scale2, shift2, CP):
    N, M, _ = act2.shape
    return pl.pallas_call(
        _affine_kernel,
        out_shape=jax.ShapeDtypeStruct((N, M, CP), jnp.float32),
        grid=(N,),
        in_specs=[
            pl.BlockSpec((1, M, CP), lambda n: (n, 0, 0)),
            pl.BlockSpec((1, CP), lambda n: (0, 0)),
            pl.BlockSpec((1, CP), lambda n: (0, 0)),
        ],
        out_specs=pl.BlockSpec((1, M, CP), lambda n: (n, 0, 0)),
        compiler_params=pltpu.CompilerParams(dimension_semantics=("parallel",)),
    )(act2, scale2, shift2)


def _bn_scale_shift(stats, gamma_p, beta_p, count, eps=1e-5):
    """Per-channel BatchNorm (training-mode batch stats) scale/shift."""
    total = jnp.sum(stats, axis=0)                  # (2, CP): [sum, sumsq]
    mean = total[0] / count
    var = jnp.maximum(total[1] / count - mean * mean, 0.0)   # biased, as torch
    scale = gamma_p / jnp.sqrt(var + eps)
    shift = beta_p - mean * scale
    return scale.reshape(1, -1), shift.reshape(1, -1)


# ------------------------------- Down module --------------------------------

def init_down_params(key, in_ch, out_ch):
    k1, k2, k3, k4 = jax.random.split(key, 4)
    return {
        "w1": jax.random.normal(k1, (3, 3, in_ch, out_ch), jnp.float32) * 0.1,
        "b1": jax.random.normal(k2, (out_ch,), jnp.float32) * 0.01,
        "gamma1": jnp.ones((out_ch,), jnp.float32),   # torch BN default init
        "beta1": jnp.zeros((out_ch,), jnp.float32),
        "w2": jax.random.normal(k3, (3, 3, out_ch, out_ch), jnp.float32) * 0.1,
        "b2": jax.random.normal(k4, (out_ch,), jnp.float32) * 0.01,
        "gamma2": jnp.ones((out_ch,), jnp.float32),
        "beta2": jnp.zeros((out_ch,), jnp.float32),
    }


def down_forward(x_nchw, params):
    x = x_nchw.astype(jnp.float32)
    N, Cin, H, W = x.shape
    assert H % 2 == 0 and W % 2 == 0
    Hs, Ws = H // 2, W // 2
    Cout = params["b1"].shape[0]
    CP = max(128, _round_up(Cout, 128))            # lane-dense channel padding

    # Fold the 2x2 pooling window into the channel axis while doing the
    # (required) NCHW -> NHWC layout change: one pass, no strided HBM copies.
    xph = (x.reshape(N, Cin, Hs, 2, Ws, 2)
             .transpose(0, 2, 4, 3, 5, 1)
             .reshape(N, Hs, Ws, 4 * Cin))

    # Channel-padded weights / bias / BN params (zero pad -> padded channels
    # stay exactly zero through the whole pipeline).
    w1p = jnp.zeros((9, Cin, CP), jnp.float32).at[:, :, :Cout].set(
        params["w1"].reshape(9, Cin, Cout))
    b1p = jnp.zeros((1, CP), jnp.float32).at[:, :Cout].set(params["b1"][None, :])
    w2p = jnp.zeros((9, CP, CP), jnp.float32).at[:, :Cout, :Cout].set(
        params["w2"].reshape(9, Cout, Cout))
    b2p = jnp.zeros((1, CP), jnp.float32).at[:, :Cout].set(params["b2"][None, :])
    g1p = jnp.zeros((CP,), jnp.float32).at[:Cout].set(params["gamma1"])
    be1p = jnp.zeros((CP,), jnp.float32).at[:Cout].set(params["beta1"])
    g2p = jnp.zeros((CP,), jnp.float32).at[:Cout].set(params["gamma2"])
    be2p = jnp.zeros((CP,), jnp.float32).at[:Cout].set(params["beta2"])

    count = N * Hs * Ws

    # pool + conv1 + ReLU (+ BN1 partial stats)
    act1, stats1 = _pool_conv1(xph, w1p, b1p, Hs, Ws, Cin, CP)
    scale1, shift1 = _bn_scale_shift(stats1, g1p, be1p, count)

    # BN1 affine + conv2 + ReLU (+ BN2 partial stats)
    act2, stats2 = _bn_conv2(act1, scale1, shift1, w2p, b2p, Hs, Ws, CP)
    scale2, shift2 = _bn_scale_shift(stats2, g2p, be2p, count)

    # BN2 affine (lane-dense elementwise kernel)
    y = _bn_affine(act2, scale2, shift2, CP)       # (N, Hs*Ws, CP)

    # Strip channel padding, restore NCHW.
    y = y[:, :, :Cout].reshape(N, Hs, Ws, Cout)
    return jnp.transpose(y, (0, 3, 1, 2))


if __name__ == "__main__":
    key = jax.random.PRNGKey(0)
    kx, kp = jax.random.split(key)

    N, in_ch, out_ch, H, W = 2, 4, 8, 16, 16
    x = jax.random.normal(kx, (N, in_ch, H, W), jnp.float32)   # NCHW like torch
    params = init_down_params(kp, in_ch, out_ch)

    out = jax.jit(down_forward)(x, params)
    out = jax.block_until_ready(out)

    assert out.shape == (N, out_ch, H // 2, W // 2), out.shape
    print("KERNEL_OK")
</pallas_src>

<mosaic_0001>
module attributes {stable_mosaic.version = 11 : i64} {
  func.func @kernel(%arg0: i32, %arg1: memref<1x8x8x16xf32, #tpu.memory_space<vmem>>, %arg2: memref<9x4x128xf32, #tpu.memory_space<vmem>>, %arg3: memref<1x128xf32, #tpu.memory_space<vmem>>, %arg4: memref<1x8x8x128xf32, #tpu.memory_space<vmem>>, %arg5: memref<1x2x128xf32, #tpu.memory_space<vmem>>, %arg6: memref<10x10x4xf32, #tpu.memory_space<vmem>>) attributes {dimension_semantics = [#tpu.dimension_semantics<parallel>], iteration_bounds = array<i64: 2>, scalar_prefetch = 0 : i64, scratch_operands = 1 : i64, tpu.core_type = #tpu.core_type<tc>, window_params = [{transform_indices = @transform_0, window_bounds = array<i64: 1, 8, 8, 16>}, {pipeline_mode = #tpu.pipeline_mode<synchronous>, transform_indices = @transform_1, window_bounds = array<i64: 9, 4, 128>}, {pipeline_mode = #tpu.pipeline_mode<synchronous>, transform_indices = @transform_2, window_bounds = array<i64: 1, 128>}, {transform_indices = @transform_3, window_bounds = array<i64: 1, 8, 8, 128>}, {transform_indices = @transform_4, window_bounds = array<i64: 1, 2, 128>}]} {
    %c0 = arith.constant 0 : index
    %c0_0 = arith.constant 0 : index
    %c0_1 = arith.constant 0 : index
    %c0_2 = arith.constant 0 : index
    %0 = vector.load %arg1[%c0, %c0_0, %c0_1, %c0_2] : memref<1x8x8x16xf32, #tpu.memory_space<vmem>>, vector<1x8x8x16xf32>
    %1 = vector.shape_cast %0 : vector<1x8x8x16xf32> to vector<8x8x16xf32>
    %2 = vector.extract_strided_slice %1 {offsets = [0, 0, 0], sizes = [8, 8, 4], strides = [1, 1, 1]} : vector<8x8x16xf32> to vector<8x8x4xf32>
    %3 = vector.extract_strided_slice %1 {offsets = [0, 0, 4], sizes = [8, 8, 4], strides = [1, 1, 1]} : vector<8x8x16xf32> to vector<8x8x4xf32>
    %4 = arith.maximumf %2, %3 : vector<8x8x4xf32>
    %5 = vector.extract_strided_slice %1 {offsets = [0, 0, 8], sizes = [8, 8, 4], strides = [1, 1, 1]} : vector<8x8x16xf32> to vector<8x8x4xf32>
    %6 = vector.extract_strided_slice %1 {offsets = [0, 0, 12], sizes = [8, 8, 4], strides = [1, 1, 1]} : vector<8x8x16xf32> to vector<8x8x4xf32>
    %7 = arith.maximumf %5, %6 : vector<8x8x4xf32>
    %8 = arith.maximumf %4, %7 : vector<8x8x4xf32>
    %cst = arith.constant 0.000000e+00 : f32
    %9 = vector.broadcast %cst : f32 to vector<10x10x4xf32>
    %c0_3 = arith.constant 0 : index
    %c0_4 = arith.constant 0 : index
    %c0_5 = arith.constant 0 : index
    %10 = vector.load %arg6[%c0_3, %c0_4, %c0_5] : memref<10x10x4xf32, #tpu.memory_space<vmem>>, vector<10x10x4xf32>
    tpu.vector_store %arg6[%c0_3, %c0_4, %c0_5], %9 {strides = array<i32>} : memref<10x10x4xf32, #tpu.memory_space<vmem>>, vector<10x10x4xf32>,
    %c1 = arith.constant 1 : index
    %c1_6 = arith.constant 1 : index
    %c0_7 = arith.constant 0 : index
    %11 = vector.load %arg6[%c1, %c1_6, %c0_7] : memref<10x10x4xf32, #tpu.memory_space<vmem>>, vector<8x8x4xf32>
    tpu.vector_store %arg6[%c1, %c1_6, %c0_7], %8 {strides = array<i32>} : memref<10x10x4xf32, #tpu.memory_space<vmem>>, vector<8x8x4xf32>,
    %cst_8 = arith.constant 0.000000e+00 : f32
    %12 = vector.broadcast %cst_8 : f32 to vector<64x128xf32>
    %c0_9 = arith.constant 0 : index
    %c0_10 = arith.constant 0 : index
    %c0_11 = arith.constant 0 : index
    %13 = vector.load %arg6[%c0_9, %c0_10, %c0_11] : memref<10x10x4xf32, #tpu.memory_space<vmem>>, vector<8x8x4xf32>
    %14 = vector.shape_cast %13 : vector<8x8x4xf32> to vector<64x4xf32>
    %c0_12 = arith.constant 0 : index
    %c0_13 = arith.constant 0 : index
    %c0_14 = arith.constant 0 : index
    %15 = vector.load %arg2[%c0_12, %c0_13, %c0_14] : memref<9x4x128xf32, #tpu.memory_space<vmem>>, vector<1x4x128xf32>
    %16 = vector.shape_cast %15 : vector<1x4x128xf32> to vector<4x128xf32>
    %cst_15 = arith.constant dense<0.000000e+00> : vector<64x128xf32>
    %17 = tpu.matmul %14, %16, %cst_15 {dimension_numbers = #tpu.dot_dimension_numbers<[1], [0], [0], [1], [0, 0, 1, 1], [], []>} : vector<64x4xf32>, vector<4x128xf32>, vector<64x128xf32> -> vector<64x128xf32>
    %18 = arith.addf %12, %17 : vector<64x128xf32>
    %c0_16 = arith.constant 0 : index
    %c1_17 = arith.constant 1 : index
    %c0_18 = arith.constant 0 : index
    %19 = vector.load %arg6[%c0_16, %c1_17, %c0_18] : memref<10x10x4xf32, #tpu.memory_space<vmem>>, vector<8x8x4xf32>
    %20 = vector.shape_cast %19 : vector<8x8x4xf32> to vector<64x4xf32>
    %c1_19 = arith.constant 1 : index
    %c0_20 = arith.constant 0 : index
    %c0_21 = arith.constant 0 : index
    %21 = vector.load %arg2[%c1_19, %c0_20, %c0_21] : memref<9x4x128xf32, #tpu.memory_space<vmem>>, vector<1x4x128xf32>
    %22 = vector.shape_cast %21 : vector<1x4x128xf32> to vector<4x128xf32>
    %cst_22 = arith.constant dense<0.000000e+00> : vector<64x128xf32>
    %23 = tpu.matmul %20, %22, %cst_22 {dimension_numbers = #tpu.dot_dimension_numbers<[1], [0], [0], [1], [0, 0, 1, 1], [], []>} : vector<64x4xf32>, vector<4x128xf32>, vector<64x128xf32> -> vector<64x128xf32>
    %24 = arith.addf %18, %23 : vector<64x128xf32>
    %c0_23 = arith.constant 0 : index
    %c2 = arith.constant 2 : index
    %c0_24 = arith.constant 0 : index
    %25 = vector.load %arg6[%c0_23, %c2, %c0_24] : memref<10x10x4xf32, #tpu.memory_space<vmem>>, vector<8x8x4xf32>
    %26 = vector.shape_cast %25 : vector<8x8x4xf32> to vector<64x4xf32>
    %c2_25 = arith.constant 2 : index
    %c0_26 = arith.constant 0 : index
    %c0_27 = arith.constant 0 : index
    %27 = vector.load %arg2[%c2_25, %c0_26, %c0_27] : memref<9x4x128xf32, #tpu.memory_space<vmem>>, vector<1x4x128xf32>
    %28 = vector.shape_cast %27 : vector<1x4x128xf32> to vector<4x128xf32>
    %cst_28 = arith.constant dense<0.000000e+00> : vector<64x128xf32>
    %29 = tpu.matmul %26, %28, %cst_28 {dimension_numbers = #tpu.dot_dimension_numbers<[1], [0], [0], [1], [0, 0, 1, 1], [], []>} : vector<64x4xf32>, vector<4x128xf32>, vector<64x128xf32> -> vector<64x128xf32>
    %30 = arith.addf %24, %29 : vector<64x128xf32>
    %c1_29 = arith.constant 1 : index
    %c0_30 = arith.constant 0 : index
    %c0_31 = arith.constant 0 : index
    %31 = vector.load %arg6[%c1_29, %c0_30, %c0_31] : memref<10x10x4xf32, #tpu.memory_space<vmem>>, vector<8x8x4xf32>
    %32 = vector.shape_cast %31 : vector<8x8x4xf32> to vector<64x4xf32>
    %c3 = arith.constant 3 : index
    %c0_32 = arith.constant 0 : index
    %c0_33 = arith.constant 0 : index
    %33 = vector.load %arg2[%c3, %c0_32, %c0_33] : memref<9x4x128xf32, #tpu.memory_space<vmem>>, vector<1x4x128xf32>
    %34 = vector.shape_cast %33 : vector<1x4x128xf32> to vector<4x128xf32>
    %cst_34 = arith.constant dense<0.000000e+00> : vector<64x128xf32>
    %35 = tpu.matmul %32, %34, %cst_34 {dimension_numbers = #tpu.dot_dimension_numbers<[1], [0], [0], [1], [0, 0, 1, 1], [], []>} : vector<64x4xf32>, vector<4x128xf32>, vector<64x128xf32> -> vector<64x128xf32>
    %36 = arith.addf %30, %35 : vector<64x128xf32>
    %c1_35 = arith.constant 1 : index
    %c1_36 = arith.constant 1 : index
    %c0_37 = arith.constant 0 : index
    %37 = vector.load %arg6[%c1_35, %c1_36, %c0_37] : memref<10x10x4xf32, #tpu.memory_space<vmem>>, vector<8x8x4xf32>
    %38 = vector.shape_cast %37 : vector<8x8x4xf32> to vector<64x4xf32>
    %c4 = arith.constant 4 : index
    %c0_38 = arith.constant 0 : index
    %c0_39 = arith.constant 0 : index
    %39 = vector.load %arg2[%c4, %c0_38, %c0_39] : memref<9x4x128xf32, #tpu.memory_space<vmem>>, vector<1x4x128xf32>
    %40 = vector.shape_cast %39 : vector<1x4x128xf32> to vector<4x128xf32>
    %cst_40 = arith.constant dense<0.000000e+00> : vector<64x128xf32>
    %41 = tpu.matmul %38, %40, %cst_40 {dimension_numbers = #tpu.dot_dimension_numbers<[1], [0], [0], [1], [0, 0, 1, 1], [], []>} : vector<64x4xf32>, vector<4x128xf32>, vector<64x128xf32> -> vector<64x128xf32>
    %42 = arith.addf %36, %41 : vector<64x128xf32>
    %c1_41 = arith.constant 1 : index
    %c2_42 = arith.constant 2 : index
    %c0_43 = arith.constant 0 : index
    %43 = vector.load %arg6[%c1_41, %c2_42, %c0_43] : memref<10x10x4xf32, #tpu.memory_space<vmem>>, vector<8x8x4xf32>
    %44 = vector.shape_cast %43 : vector<8x8x4xf32> to vector<64x4xf32>
    %c5 = arith.constant 5 : index
    %c0_44 = arith.constant 0 : index
    %c0_45 = arith.constant 0 : index
    %45 = vector.load %arg2[%c5, %c0_44, %c0_45] : memref<9x4x128xf32, #tpu.memory_space<vmem>>, vector<1x4x128xf32>
    %46 = vector.shape_cast %45 : vector<1x4x128xf32> to vector<4x128xf32>
    %cst_46 = arith.constant dense<0.000000e+00> : vector<64x128xf32>
    %47 = tpu.matmul %44, %46, %cst_46 {dimension_numbers = #tpu.dot_dimension_numbers<[1], [0], [0], [1], [0, 0, 1, 1], [], []>} : vector<64x4xf32>, vector<4x128xf32>, vector<64x128xf32> -> vector<64x128xf32>
    %48 = arith.addf %42, %47 : vector<64x128xf32>
    %c2_47 = arith.constant 2 : index
    %c0_48 = arith.constant 0 : index
    %c0_49 = arith.constant 0 : index
    %49 = vector.load %arg6[%c2_47, %c0_48, %c0_49] : memref<10x10x4xf32, #tpu.memory_space<vmem>>, vector<8x8x4xf32>
    %50 = vector.shape_cast %49 : vector<8x8x4xf32> to vector<64x4xf32>
    %c6 = arith.constant 6 : index
    %c0_50 = arith.constant 0 : index
    %c0_51 = arith.constant 0 : index
    %51 = vector.load %arg2[%c6, %c0_50, %c0_51] : memref<9x4x128xf32, #tpu.memory_space<vmem>>, vector<1x4x128xf32>
    %52 = vector.shape_cast %51 : vector<1x4x128xf32> to vector<4x128xf32>
    %cst_52 = arith.constant dense<0.000000e+00> : vector<64x128xf32>
    %53 = tpu.matmul %50, %52, %cst_52 {dimension_numbers = #tpu.dot_dimension_numbers<[1], [0], [0], [1], [0, 0, 1, 1], [], []>} : vector<64x4xf32>, vector<4x128xf32>, vector<64x128xf32> -> vector<64x128xf32>
    %54 = arith.addf %48, %53 : vector<64x128xf32>
    %c2_53 = arith.constant 2 : index
    %c1_54 = arith.constant 1 : index
    %c0_55 = arith.constant 0 : index
    %55 = vector.load %arg6[%c2_53, %c1_54, %c0_55] : memref<10x10x4xf32, #tpu.memory_space<vmem>>, vector<8x8x4xf32>
    %56 = vector.shape_cast %55 : vector<8x8x4xf32> to vector<64x4xf32>
    %c7 = arith.constant 7 : index
    %c0_56 = arith.constant 0 : index
    %c0_57 = arith.constant 0 : index
    %57 = vector.load %arg2[%c7, %c0_56, %c0_57] : memref<9x4x128xf32, #tpu.memory_space<vmem>>, vector<1x4x128xf32>
    %58 = vector.shape_cast %57 : vector<1x4x128xf32> to vector<4x128xf32>
    %cst_58 = arith.constant dense<0.000000e+00> : vector<64x128xf32>
    %59 = tpu.matmul %56, %58, %cst_58 {dimension_numbers = #tpu.dot_dimension_numbers<[1], [0], [0], [1], [0, 0, 1, 1], [], []>} : vector<64x4xf32>, vector<4x128xf32>, vector<64x128xf32> -> vector<64x128xf32>
    %60 = arith.addf %54, %59 : vector<64x128xf32>
    %c2_59 = arith.constant 2 : index
    %c2_60 = arith.constant 2 : index
    %c0_61 = arith.constant 0 : index
    %61 = vector.load %arg6[%c2_59, %c2_60, %c0_61] : memref<10x10x4xf32, #tpu.memory_space<vmem>>, vector<8x8x4xf32>
    %62 = vector.shape_cast %61 : vector<8x8x4xf32> to vector<64x4xf32>
    %c8 = arith.constant 8 : index
    %c0_62 = arith.constant 0 : index
    %c0_63 = arith.constant 0 : index
    %63 = vector.load %arg2[%c8, %c0_62, %c0_63] : memref<9x4x128xf32, #tpu.memory_space<vmem>>, vector<1x4x128xf32>
    %64 = vector.shape_cast %63 : vector<1x4x128xf32> to vector<4x128xf32>
    %cst_64 = arith.constant dense<0.000000e+00> : vector<64x128xf32>
    %65 = tpu.matmul %62, %64, %cst_64 {dimension_numbers = #tpu.dot_dimension_numbers<[1], [0], [0], [1], [0, 0, 1, 1], [], []>} : vector<64x4xf32>, vector<4x128xf32>, vector<64x128xf32> -> vector<64x128xf32>
    %66 = arith.addf %60, %65 : vector<64x128xf32>
    %c0_65 = arith.constant 0 : index
    %c0_66 = arith.constant 0 : index
    %67 = vector.load %arg3[%c0_65, %c0_66] : memref<1x128xf32, #tpu.memory_space<vmem>>, vector<1x128xf32>
    %68 = vector.broadcast %67 : vector<1x128xf32> to vector<64x128xf32>
    %69 = arith.addf %66, %68 : vector<64x128xf32>
    %cst_67 = arith.constant 0.000000e+00 : f32
    %70 = vector.broadcast %cst_67 : f32 to vector<64x128xf32>
    %71 = arith.maximumf %69, %70 : vector<64x128xf32>
    %72 = vector.shape_cast %71 : vector<64x128xf32> to vector<8x8x128xf32>
    %c0_68 = arith.constant 0 : index
    %c0_69 = arith.constant 0 : index
    %c0_70 = arith.constant 0 : index
    %c0_71 = arith.constant 0 : index
    %73 = vector.load %arg4[%c0_68, %c0_69, %c0_70, %c0_71] : memref<1x8x8x128xf32, #tpu.memory_space<vmem>>, vector<1x8x8x128xf32>
    %74 = vector.shape_cast %73 : vector<1x8x8x128xf32> to vector<8x8x128xf32>
    %75 = vector.shape_cast %72 : vector<8x8x128xf32> to vector<1x8x8x128xf32>
    tpu.vector_store %arg4[%c0_68, %c0_69, %c0_70, %c0_71], %75 {strides = array<i32>} : memref<1x8x8x128xf32, #tpu.memory_space<vmem>>, vector<1x8x8x128xf32>,
    %cst_72 = arith.constant dense<0.000000e+00> : vector<128xf32>
    %76 = vector.multi_reduction <add>, %71, %cst_72 [0] : vector<64x128xf32> to vector<128xf32>
    %77 = vector.shape_cast %76 : vector<128xf32> to vector<1x128xf32>
    %c0_73 = arith.constant 0 : index
    %c0_74 = arith.constant 0 : index
    %c0_75 = arith.constant 0 : index
    %78 = vector.load %arg5[%c0_73, %c0_74, %c0_75] : memref<1x2x128xf32, #tpu.memory_space<vmem>>, vector<1x1x128xf32>
    %79 = vector.shape_cast %78 : vector<1x1x128xf32> to vector<1x128xf32>
    %80 = vector.shape_cast %77 : vector<1x128xf32> to vector<1x1x128xf32>
    tpu.vector_store %arg5[%c0_73, %c0_74, %c0_75], %80 {strides = array<i32>} : memref<1x2x128xf32, #tpu.memory_space<vmem>>, vector<1x1x128xf32>,
    %81 = arith.mulf %71, %71 : vector<64x128xf32>
    %cst_76 = arith.constant dense<0.000000e+00> : vector<128xf32>
    %82 = vector.multi_reduction <add>, %81, %cst_76 [0] : vector<64x128xf32> to vector<128xf32>
    %83 = vector.shape_cast %82 : vector<128xf32> to vector<1x128xf32>
    %c0_77 = arith.constant 0 : index
    %c1_78 = arith.constant 1 : index
    %c0_79 = arith.constant 0 : index
    %84 = vector.load %arg5[%c0_77, %c1_78, %c0_79] : memref<1x2x128xf32, #tpu.memory_space<vmem>>, vector<1x1x128xf32>
    %85 = vector.shape_cast %84 : vector<1x1x128xf32> to vector<1x128xf32>
    %86 = vector.shape_cast %83 : vector<1x128xf32> to vector<1x1x128xf32>
    tpu.vector_store %arg5[%c0_77, %c1_78, %c0_79], %86 {strides = array<i32>} : memref<1x2x128xf32, #tpu.memory_space<vmem>>, vector<1x1x128xf32>,
    return
  }
  func.func @transform_0(%arg0: i32) -> (i32, i32, i32, i32) {
    %c0_i32 = arith.constant 0 : i32
    %c0_i32_0 = arith.constant 0 : i32
    %c0_i32_1 = arith.constant 0 : i32
    %c0_i32_2 = arith.constant 0 : i32
    return %arg0, %c0_i32, %c0_i32_0, %c0_i32_1 : i32, i32, i32, i32
  }
  func.func @transform_1(%arg0: i32) -> (i32, i32, i32) {
    %c0_i32 = arith.constant 0 : i32
    %c0_i32_0 = arith.constant 0 : i32
    %c0_i32_1 = arith.constant 0 : i32
    %c0_i32_2 = arith.constant 0 : i32
    return %c0_i32, %c0_i32_0, %c0_i32_1 : i32, i32, i32
  }
  func.func @transform_2(%arg0: i32) -> (i32, i32) {
    %c0_i32 = arith.constant 0 : i32
    %c0_i32_0 = arith.constant 0 : i32
    %c0_i32_1 = arith.constant 0 : i32
    return %c0_i32, %c0_i32_0 : i32, i32
  }
  func.func @transform_3(%arg0: i32) -> (i32, i32, i32, i32) {
    %c0_i32 = arith.constant 0 : i32
    %c0_i32_0 = arith.constant 0 : i32
    %c0_i32_1 = arith.constant 0 : i32
    %c0_i32_2 = arith.constant 0 : i32
    return %arg0, %c0_i32, %c0_i32_0, %c0_i32_1 : i32, i32, i32, i32
  }
  func.func @transform_4(%arg0: i32) -> (i32, i32, i32) {
    %c0_i32 = arith.constant 0 : i32
    %c0_i32_0 = arith.constant 0 : i32
    %c0_i32_1 = arith.constant 0 : i32
    return %arg0, %c0_i32, %c0_i32_0 : i32, i32, i32
  }
}

module attributes {stable_mosaic.version = 11 : i64} {
  func.func @_affine_kernel(%arg0: i32, %arg1: memref<1x64x128xf32, #tpu.memory_space<vmem>>, %arg2: memref<1x128xf32, #tpu.memory_space<vmem>>, %arg3: memref<1x128xf32, #tpu.memory_space<vmem>>, %arg4: memref<1x64x128xf32, #tpu.memory_space<vmem>>) attributes {dimension_semantics = [#tpu.dimension_semantics<parallel>], iteration_bounds = array<i64: 2>, scalar_prefetch = 0 : i64, scratch_operands = 0 : i64, tpu.core_type = #tpu.core_type<tc>, window_params = [{transform_indices = @transform_0, window_bounds = array<i64: 1, 64, 128>}, {pipeline_mode = #tpu.pipeline_mode<synchronous>, transform_indices = @transform_1, window_bounds = array<i64: 1, 128>}, {pipeline_mode = #tpu.pipeline_mode<synchronous>, transform_indices = @transform_2, window_bounds = array<i64: 1, 128>}, {transform_indices = @transform_3, window_bounds = array<i64: 1, 64, 128>}]} {
    %c0 = arith.constant 0 : index
    %c0_0 = arith.constant 0 : index
    %c0_1 = arith.constant 0 : index
    %0 = vector.load %arg1[%c0, %c0_0, %c0_1] : memref<1x64x128xf32, #tpu.memory_space<vmem>>, vector<1x64x128xf32>
    %c0_2 = arith.constant 0 : index
    %c0_3 = arith.constant 0 : index
    %1 = vector.load %arg2[%c0_2, %c0_3] : memref<1x128xf32, #tpu.memory_space<vmem>>, vector<1x128xf32>
    %2 = vector.shape_cast %1 : vector<1x128xf32> to vector<1x1x128xf32>
    %3 = vector.broadcast %2 : vector<1x1x128xf32> to vector<1x64x128xf32>
    %4 = arith.mulf %0, %3 : vector<1x64x128xf32>
    %c0_4 = arith.constant 0 : index
    %c0_5 = arith.constant 0 : index
    %5 = vector.load %arg3[%c0_4, %c0_5] : memref<1x128xf32, #tpu.memory_space<vmem>>, vector<1x128xf32>
    %6 = vector.shape_cast %5 : vector<1x128xf32> to vector<1x1x128xf32>
    %7 = vector.broadcast %6 : vector<1x1x128xf32> to vector<1x64x128xf32>
    %8 = arith.addf %4, %7 : vector<1x64x128xf32>
    %c0_6 = arith.constant 0 : index
    %c0_7 = arith.constant 0 : index
    %c0_8 = arith.constant 0 : index
    %9 = vector.load %arg4[%c0_6, %c0_7, %c0_8] : memref<1x64x128xf32, #tpu.memory_space<vmem>>, vector<1x64x128xf32>
    tpu.vector_store %arg4[%c0_6, %c0_7, %c0_8], %8 {strides = array<i32>} : memref<1x64x128xf32, #tpu.memory_space<vmem>>, vector<1x64x128xf32>,
    return
  }
  func.func @transform_0(%arg0: i32) -> (i32, i32, i32) {
    %c0_i32 = arith.constant 0 : i32
    %c0_i32_0 = arith.constant 0 : i32
    %c0_i32_1 = arith.constant 0 : i32
    return %arg0, %c0_i32, %c0_i32_0 : i32, i32, i32
  }
  func.func @transform_1(%arg0: i32) -> (i32, i32) {
    %c0_i32 = arith.constant 0 : i32
    %c0_i32_0 = arith.constant 0 : i32
    %c0_i32_1 = arith.constant 0 : i32
    return %c0_i32, %c0_i32_0 : i32, i32
  }
  func.func @transform_2(%arg0: i32) -> (i32, i32) {
    %c0_i32 = arith.constant 0 : i32
    %c0_i32_0 = arith.constant 0 : i32
    %c0_i32_1 = arith.constant 0 : i32
    return %c0_i32, %c0_i32_0 : i32, i32
  }
  func.func @transform_3(%arg0: i32) -> (i32, i32, i32) {
    %c0_i32 = arith.constant 0 : i32
    %c0_i32_0 = arith.constant 0 : i32
    %c0_i32_1 = arith.constant 0 : i32
    return %arg0, %c0_i32, %c0_i32_0 : i32, i32, i32
  }
}

module attributes {stable_mosaic.version = 11 : i64} {
  func.func @kernel(%arg0: i32, %arg1: memref<1x8x8x128xf32, #tpu.memory_space<vmem>>, %arg2: memref<1x128xf32, #tpu.memory_space<vmem>>, %arg3: memref<1x128xf32, #tpu.memory_space<vmem>>, %arg4: memref<9x128x128xf32, #tpu.memory_space<vmem>>, %arg5: memref<1x128xf32, #tpu.memory_space<vmem>>, %arg6: memref<1x64x128xf32, #tpu.memory_space<vmem>>, %arg7: memref<1x2x128xf32, #tpu.memory_space<vmem>>, %arg8: memref<10x10x128xf32, #tpu.memory_space<vmem>>) attributes {dimension_semantics = [#tpu.dimension_semantics<parallel>], iteration_bounds = array<i64: 2>, scalar_prefetch = 0 : i64, scratch_operands = 1 : i64, tpu.core_type = #tpu.core_type<tc>, window_params = [{transform_indices = @transform_0, window_bounds = array<i64: 1, 8, 8, 128>}, {pipeline_mode = #tpu.pipeline_mode<synchronous>, transform_indices = @transform_1, window_bounds = array<i64: 1, 128>}, {pipeline_mode = #tpu.pipeline_mode<synchronous>, transform_indices = @transform_2, window_bounds = array<i64: 1, 128>}, {pipeline_mode = #tpu.pipeline_mode<synchronous>, transform_indices = @transform_3, window_bounds = array<i64: 9, 128, 128>}, {pipeline_mode = #tpu.pipeline_mode<synchronous>, transform_indices = @transform_4, window_bounds = array<i64: 1, 128>}, {transform_indices = @transform_5, window_bounds = array<i64: 1, 64, 128>}, {transform_indices = @transform_6, window_bounds = array<i64: 1, 2, 128>}]} {
    %c0 = arith.constant 0 : index
    %c0_0 = arith.constant 0 : index
    %c0_1 = arith.constant 0 : index
    %c0_2 = arith.constant 0 : index
    %0 = vector.load %arg1[%c0, %c0_0, %c0_1, %c0_2] : memref<1x8x8x128xf32, #tpu.memory_space<vmem>>, vector<1x8x8x128xf32>
    %1 = vector.shape_cast %0 : vector<1x8x8x128xf32> to vector<8x8x128xf32>
    %c0_3 = arith.constant 0 : index
    %c0_4 = arith.constant 0 : index
    %2 = vector.load %arg2[%c0_3, %c0_4] : memref<1x128xf32, #tpu.memory_space<vmem>>, vector<1x128xf32>
    %3 = vector.shape_cast %2 : vector<1x128xf32> to vector<1x1x128xf32>
    %4 = vector.broadcast %3 : vector<1x1x128xf32> to vector<8x8x128xf32>
    %5 = arith.mulf %1, %4 : vector<8x8x128xf32>
    %c0_5 = arith.constant 0 : index
    %c0_6 = arith.constant 0 : index
    %6 = vector.load %arg3[%c0_5, %c0_6] : memref<1x128xf32, #tpu.memory_space<vmem>>, vector<1x128xf32>
    %7 = vector.shape_cast %6 : vector<1x128xf32> to vector<1x1x128xf32>
    %8 = vector.broadcast %7 : vector<1x1x128xf32> to vector<8x8x128xf32>
    %9 = arith.addf %5, %8 : vector<8x8x128xf32>
    %cst = arith.constant 0.000000e+00 : f32
    %10 = vector.broadcast %cst : f32 to vector<10x10x128xf32>
    %c0_7 = arith.constant 0 : index
    %c0_8 = arith.constant 0 : index
    %c0_9 = arith.constant 0 : index
    %11 = vector.load %arg8[%c0_7, %c0_8, %c0_9] : memref<10x10x128xf32, #tpu.memory_space<vmem>>, vector<10x10x128xf32>
    tpu.vector_store %arg8[%c0_7, %c0_8, %c0_9], %10 {strides = array<i32>} : memref<10x10x128xf32, #tpu.memory_space<vmem>>, vector<10x10x128xf32>,
    %c1 = arith.constant 1 : index
    %c1_10 = arith.constant 1 : index
    %c0_11 = arith.constant 0 : index
    %12 = vector.load %arg8[%c1, %c1_10, %c0_11] : memref<10x10x128xf32, #tpu.memory_space<vmem>>, vector<8x8x128xf32>
    tpu.vector_store %arg8[%c1, %c1_10, %c0_11], %9 {strides = array<i32>} : memref<10x10x128xf32, #tpu.memory_space<vmem>>, vector<8x8x128xf32>,
    %cst_12 = arith.constant 0.000000e+00 : f32
    %13 = vector.broadcast %cst_12 : f32 to vector<64x128xf32>
    %c0_13 = arith.constant 0 : index
    %c0_14 = arith.constant 0 : index
    %c0_15 = arith.constant 0 : index
    %14 = vector.load %arg8[%c0_13, %c0_14, %c0_15] : memref<10x10x128xf32, #tpu.memory_space<vmem>>, vector<8x8x128xf32>
    %15 = vector.shape_cast %14 : vector<8x8x128xf32> to vector<64x128xf32>
    %c0_16 = arith.constant 0 : index
    %c0_17 = arith.constant 0 : index
    %c0_18 = arith.constant 0 : index
    %16 = vector.load %arg4[%c0_16, %c0_17, %c0_18] : memref<9x128x128xf32, #tpu.memory_space<vmem>>, vector<1x128x128xf32>
    %17 = vector.shape_cast %16 : vector<1x128x128xf32> to vector<128x128xf32>
    %cst_19 = arith.constant dense<0.000000e+00> : vector<64x128xf32>
    %18 = tpu.matmul %15, %17, %cst_19 {dimension_numbers = #tpu.dot_dimension_numbers<[1], [0], [0], [1], [0, 0, 1, 1], [], []>} : vector<64x128xf32>, vector<128x128xf32>, vector<64x128xf32> -> vector<64x128xf32>
    %19 = arith.addf %13, %18 : vector<64x128xf32>
    %c0_20 = arith.constant 0 : index
    %c1_21 = arith.constant 1 : index
    %c0_22 = arith.constant 0 : index
    %20 = vector.load %arg8[%c0_20, %c1_21, %c0_22] : memref<10x10x128xf32, #tpu.memory_space<vmem>>, vector<8x8x128xf32>
    %21 = vector.shape_cast %20 : vector<8x8x128xf32> to vector<64x128xf32>
    %c1_23 = arith.constant 1 : index
    %c0_24 = arith.constant 0 : index
    %c0_25 = arith.constant 0 : index
    %22 = vector.load %arg4[%c1_23, %c0_24, %c0_25] : memref<9x128x128xf32, #tpu.memory_space<vmem>>, vector<1x128x128xf32>
    %23 = vector.shape_cast %22 : vector<1x128x128xf32> to vector<128x128xf32>
    %cst_26 = arith.constant dense<0.000000e+00> : vector<64x128xf32>
    %24 = tpu.matmul %21, %23, %cst_26 {dimension_numbers = #tpu.dot_dimension_numbers<[1], [0], [0], [1], [0, 0, 1, 1], [], []>} : vector<64x128xf32>, vector<128x128xf32>, vector<64x128xf32> -> vector<64x128xf32>
    %25 = arith.addf %19, %24 : vector<64x128xf32>
    %c0_27 = arith.constant 0 : index
    %c2 = arith.constant 2 : index
    %c0_28 = arith.constant 0 : index
    %26 = vector.load %arg8[%c0_27, %c2, %c0_28] : memref<10x10x128xf32, #tpu.memory_space<vmem>>, vector<8x8x128xf32>
    %27 = vector.shape_cast %26 : vector<8x8x128xf32> to vector<64x128xf32>
    %c2_29 = arith.constant 2 : index
    %c0_30 = arith.constant 0 : index
    %c0_31 = arith.constant 0 : index
    %28 = vector.load %arg4[%c2_29, %c0_30, %c0_31] : memref<9x128x128xf32, #tpu.memory_space<vmem>>, vector<1x128x128xf32>
    %29 = vector.shape_cast %28 : vector<1x128x128xf32> to vector<128x128xf32>
    %cst_32 = arith.constant dense<0.000000e+00> : vector<64x128xf32>
    %30 = tpu.matmul %27, %29, %cst_32 {dimension_numbers = #tpu.dot_dimension_numbers<[1], [0], [0], [1], [0, 0, 1, 1], [], []>} : vector<64x128xf32>, vector<128x128xf32>, vector<64x128xf32> -> vector<64x128xf32>
    %31 = arith.addf %25, %30 : vector<64x128xf32>
    %c1_33 = arith.constant 1 : index
    %c0_34 = arith.constant 0 : index
    %c0_35 = arith.constant 0 : index
    %32 = vector.load %arg8[%c1_33, %c0_34, %c0_35] : memref<10x10x128xf32, #tpu.memory_space<vmem>>, vector<8x8x128xf32>
    %33 = vector.shape_cast %32 : vector<8x8x128xf32> to vector<64x128xf32>
    %c3 = arith.constant 3 : index
    %c0_36 = arith.constant 0 : index
    %c0_37 = arith.constant 0 : index
    %34 = vector.load %arg4[%c3, %c0_36, %c0_37] : memref<9x128x128xf32, #tpu.memory_space<vmem>>, vector<1x128x128xf32>
    %35 = vector.shape_cast %34 : vector<1x128x128xf32> to vector<128x128xf32>
    %cst_38 = arith.constant dense<0.000000e+00> : vector<64x128xf32>
    %36 = tpu.matmul %33, %35, %cst_38 {dimension_numbers = #tpu.dot_dimension_numbers<[1], [0], [0], [1], [0, 0, 1, 1], [], []>} : vector<64x128xf32>, vector<128x128xf32>, vector<64x128xf32> -> vector<64x128xf32>
    %37 = arith.addf %31, %36 : vector<64x128xf32>
    %c1_39 = arith.constant 1 : index
    %c1_40 = arith.constant 1 : index
    %c0_41 = arith.constant 0 : index
    %38 = vector.load %arg8[%c1_39, %c1_40, %c0_41] : memref<10x10x128xf32, #tpu.memory_space<vmem>>, vector<8x8x128xf32>
    %39 = vector.shape_cast %38 : vector<8x8x128xf32> to vector<64x128xf32>
    %c4 = arith.constant 4 : index
    %c0_42 = arith.constant 0 : index
    %c0_43 = arith.constant 0 : index
    %40 = vector.load %arg4[%c4, %c0_42, %c0_43] : memref<9x128x128xf32, #tpu.memory_space<vmem>>, vector<1x128x128xf32>
    %41 = vector.shape_cast %40 : vector<1x128x128xf32> to vector<128x128xf32>
    %cst_44 = arith.constant dense<0.000000e+00> : vector<64x128xf32>
    %42 = tpu.matmul %39, %41, %cst_44 {dimension_numbers = #tpu.dot_dimension_numbers<[1], [0], [0], [1], [0, 0, 1, 1], [], []>} : vector<64x128xf32>, vector<128x128xf32>, vector<64x128xf32> -> vector<64x128xf32>
    %43 = arith.addf %37, %42 : vector<64x128xf32>
    %c1_45 = arith.constant 1 : index
    %c2_46 = arith.constant 2 : index
    %c0_47 = arith.constant 0 : index
    %44 = vector.load %arg8[%c1_45, %c2_46, %c0_47] : memref<10x10x128xf32, #tpu.memory_space<vmem>>, vector<8x8x128xf32>
    %45 = vector.shape_cast %44 : vector<8x8x128xf32> to vector<64x128xf32>
    %c5 = arith.constant 5 : index
    %c0_48 = arith.constant 0 : index
    %c0_49 = arith.constant 0 : index
    %46 = vector.load %arg4[%c5, %c0_48, %c0_49] : memref<9x128x128xf32, #tpu.memory_space<vmem>>, vector<1x128x128xf32>
    %47 = vector.shape_cast %46 : vector<1x128x128xf32> to vector<128x128xf32>
    %cst_50 = arith.constant dense<0.000000e+00> : vector<64x128xf32>
    %48 = tpu.matmul %45, %47, %cst_50 {dimension_numbers = #tpu.dot_dimension_numbers<[1], [0], [0], [1], [0, 0, 1, 1], [], []>} : vector<64x128xf32>, vector<128x128xf32>, vector<64x128xf32> -> vector<64x128xf32>
    %49 = arith.addf %43, %48 : vector<64x128xf32>
    %c2_51 = arith.constant 2 : index
    %c0_52 = arith.constant 0 : index
    %c0_53 = arith.constant 0 : index
    %50 = vector.load %arg8[%c2_51, %c0_52, %c0_53] : memref<10x10x128xf32, #tpu.memory_space<vmem>>, vector<8x8x128xf32>
    %51 = vector.shape_cast %50 : vector<8x8x128xf32> to vector<64x128xf32>
    %c6 = arith.constant 6 : index
    %c0_54 = arith.constant 0 : index
    %c0_55 = arith.constant 0 : index
    %52 = vector.load %arg4[%c6, %c0_54, %c0_55] : memref<9x128x128xf32, #tpu.memory_space<vmem>>, vector<1x128x128xf32>
    %53 = vector.shape_cast %52 : vector<1x128x128xf32> to vector<128x128xf32>
    %cst_56 = arith.constant dense<0.000000e+00> : vector<64x128xf32>
    %54 = tpu.matmul %51, %53, %cst_56 {dimension_numbers = #tpu.dot_dimension_numbers<[1], [0], [0], [1], [0, 0, 1, 1], [], []>} : vector<64x128xf32>, vector<128x128xf32>, vector<64x128xf32> -> vector<64x128xf32>
    %55 = arith.addf %49, %54 : vector<64x128xf32>
    %c2_57 = arith.constant 2 : index
    %c1_58 = arith.constant 1 : index
    %c0_59 = arith.constant 0 : index
    %56 = vector.load %arg8[%c2_57, %c1_58, %c0_59] : memref<10x10x128xf32, #tpu.memory_space<vmem>>, vector<8x8x128xf32>
    %57 = vector.shape_cast %56 : vector<8x8x128xf32> to vector<64x128xf32>
    %c7 = arith.constant 7 : index
    %c0_60 = arith.constant 0 : index
    %c0_61 = arith.constant 0 : index
    %58 = vector.load %arg4[%c7, %c0_60, %c0_61] : memref<9x128x128xf32, #tpu.memory_space<vmem>>, vector<1x128x128xf32>
    %59 = vector.shape_cast %58 : vector<1x128x128xf32> to vector<128x128xf32>
    %cst_62 = arith.constant dense<0.000000e+00> : vector<64x128xf32>
    %60 = tpu.matmul %57, %59, %cst_62 {dimension_numbers = #tpu.dot_dimension_numbers<[1], [0], [0], [1], [0, 0, 1, 1], [], []>} : vector<64x128xf32>, vector<128x128xf32>, vector<64x128xf32> -> vector<64x128xf32>
    %61 = arith.addf %55, %60 : vector<64x128xf32>
    %c2_63 = arith.constant 2 : index
    %c2_64 = arith.constant 2 : index
    %c0_65 = arith.constant 0 : index
    %62 = vector.load %arg8[%c2_63, %c2_64, %c0_65] : memref<10x10x128xf32, #tpu.memory_space<vmem>>, vector<8x8x128xf32>
    %63 = vector.shape_cast %62 : vector<8x8x128xf32> to vector<64x128xf32>
    %c8 = arith.constant 8 : index
    %c0_66 = arith.constant 0 : index
    %c0_67 = arith.constant 0 : index
    %64 = vector.load %arg4[%c8, %c0_66, %c0_67] : memref<9x128x128xf32, #tpu.memory_space<vmem>>, vector<1x128x128xf32>
    %65 = vector.shape_cast %64 : vector<1x128x128xf32> to vector<128x128xf32>
    %cst_68 = arith.constant dense<0.000000e+00> : vector<64x128xf32>
    %66 = tpu.matmul %63, %65, %cst_68 {dimension_numbers = #tpu.dot_dimension_numbers<[1], [0], [0], [1], [0, 0, 1, 1], [], []>} : vector<64x128xf32>, vector<128x128xf32>, vector<64x128xf32> -> vector<64x128xf32>
    %67 = arith.addf %61, %66 : vector<64x128xf32>
    %c0_69 = arith.constant 0 : index
    %c0_70 = arith.constant 0 : index
    %68 = vector.load %arg5[%c0_69, %c0_70] : memref<1x128xf32, #tpu.memory_space<vmem>>, vector<1x128xf32>
    %69 = vector.broadcast %68 : vector<1x128xf32> to vector<64x128xf32>
    %70 = arith.addf %67, %69 : vector<64x128xf32>
    %cst_71 = arith.constant 0.000000e+00 : f32
    %71 = vector.broadcast %cst_71 : f32 to vector<64x128xf32>
    %72 = arith.maximumf %70, %71 : vector<64x128xf32>
    %c0_72 = arith.constant 0 : index
    %c0_73 = arith.constant 0 : index
    %c0_74 = arith.constant 0 : index
    %73 = vector.load %arg6[%c0_72, %c0_73, %c0_74] : memref<1x64x128xf32, #tpu.memory_space<vmem>>, vector<1x64x128xf32>
    %74 = vector.shape_cast %73 : vector<1x64x128xf32> to vector<64x128xf32>
    %75 = vector.shape_cast %72 : vector<64x128xf32> to vector<1x64x128xf32>
    tpu.vector_store %arg6[%c0_72, %c0_73, %c0_74], %75 {strides = array<i32>} : memref<1x64x128xf32, #tpu.memory_space<vmem>>, vector<1x64x128xf32>,
    %cst_75 = arith.constant dense<0.000000e+00> : vector<128xf32>
    %76 = vector.multi_reduction <add>, %72, %cst_75 [0] : vector<64x128xf32> to vector<128xf32>
    %77 = vector.shape_cast %76 : vector<128xf32> to vector<1x128xf32>
    %c0_76 = arith.constant 0 : index
    %c0_77 = arith.constant 0 : index
    %c0_78 = arith.constant 0 : index
    %78 = vector.load %arg7[%c0_76, %c0_77, %c0_78] : memref<1x2x128xf32, #tpu.memory_space<vmem>>, vector<1x1x128xf32>
    %79 = vector.shape_cast %78 : vector<1x1x128xf32> to vector<1x128xf32>
    %80 = vector.shape_cast %77 : vector<1x128xf32> to vector<1x1x128xf32>
    tpu.vector_store %arg7[%c0_76, %c0_77, %c0_78], %80 {strides = array<i32>} : memref<1x2x128xf32, #tpu.memory_space<vmem>>, vector<1x1x128xf32>,
    %81 = arith.mulf %72, %72 : vector<64x128xf32>
    %cst_79 = arith.constant dense<0.000000e+00> : vector<128xf32>
    %82 = vector.multi_reduction <add>, %81, %cst_79 [0] : vector<64x128xf32> to vector<128xf32>
    %83 = vector.shape_cast %82 : vector<128xf32> to vector<1x128xf32>
    %c0_80 = arith.constant 0 : index
    %c1_81 = arith.constant 1 : index
    %c0_82 = arith.constant 0 : index
    %84 = vector.load %arg7[%c0_80, %c1_81, %c0_82] : memref<1x2x128xf32, #tpu.memory_space<vmem>>, vector<1x1x128xf32>
    %85 = vector.shape_cast %84 : vector<1x1x128xf32> to vector<1x128xf32>
    %86 = vector.shape_cast %83 : vector<1x128xf32> to vector<1x1x128xf32>
    tpu.vector_store %arg7[%c0_80, %c1_81, %c0_82], %86 {strides = array<i32>} : memref<1x2x128xf32, #tpu.memory_space<vmem>>, vector<1x1x128xf32>,
    return
  }
  func.func @transform_0(%arg0: i32) -> (i32, i32, i32, i32) {
    %c0_i32 = arith.constant 0 : i32
    %c0_i32_0 = arith.constant 0 : i32
    %c0_i32_1 = arith.constant 0 : i32
    %c0_i32_2 = arith.constant 0 : i32
    return %arg0, %c0_i32, %c0_i32_0, %c0_i32_1 : i32, i32, i32, i32
  }
  func.func @transform_1(%arg0: i32) -> (i32, i32) {
    %c0_i32 = arith.constant 0 : i32
    %c0_i32_0 = arith.constant 0 : i32
    %c0_i32_1 = arith.constant 0 : i32
    return %c0_i32, %c0_i32_0 : i32, i32
  }
  func.func @transform_2(%arg0: i32) -> (i32, i32) {
    %c0_i32 = arith.constant 0 : i32
    %c0_i32_0 = arith.constant 0 : i32
    %c0_i32_1 = arith.constant 0 : i32
    return %c0_i32, %c0_i32_0 : i32, i32
  }
  func.func @transform_3(%arg0: i32) -> (i32, i32, i32) {
    %c0_i32 = arith.constant 0 : i32
    %c0_i32_0 = arith.constant 0 : i32
    %c0_i32_1 = arith.constant 0 : i32
    %c0_i32_2 = arith.constant 0 : i32
    return %c0_i32, %c0_i32_0, %c0_i32_1 : i32, i32, i32
  }
  func.func @transform_4(%arg0: i32) -> (i32, i32) {
    %c0_i32 = arith.constant 0 : i32
    %c0_i32_0 = arith.constant 0 : i32
    %c0_i32_1 = arith.constant 0 : i32
    return %c0_i32, %c0_i32_0 : i32, i32
  }
  func.func @transform_5(%arg0: i32) -> (i32, i32, i32) {
    %c0_i32 = arith.constant 0 : i32
    %c0_i32_0 = arith.constant 0 : i32
    %c0_i32_1 = arith.constant 0 : i32
    return %arg0, %c0_i32, %c0_i32_0 : i32, i32, i32
  }
  func.func @transform_6(%arg0: i32) -> (i32, i32, i32) {
    %c0_i32 = arith.constant 0 : i32
    %c0_i32_0 = arith.constant 0 : i32
    %c0_i32_1 = arith.constant 0 : i32
    return %arg0, %c0_i32, %c0_i32_0 : i32, i32, i32
  }
}

</mosaic_0001>

<bundles_post_ra>
// kernel: down_forward.3
= control target key start
LH: loop header
LB: loop body
LE: loop exit
PB: predicated region body
PF: predicated region fallthrough
CT: control target
= control target key end

     0   :  { %s1391_s15 = smov 0   ;;  %s1722_s0 = inlined_call_operand.vmem [shape: f32[2,8,8,16], index: 0, kind: input, shape index: {}]   ;;  %s1723_s1 = inlined_call_operand.vmem [shape: f32[9,4,128], index: 1, kind: input, shape index: {}]   ;;  %s1724_s2 = inlined_call_operand.vmem [shape: f32[1,128], index: 2, kind: input, shape index: {}]   ;;  %s1725_s3 = inlined_call_operand.vmem [shape: f32[2,8,8,128], index: 3, kind: output, shape index: {0}]   ;;  %s1726_s4 = inlined_call_operand.vmem [shape: f32[2,2,128], index: 4, kind: output, shape index: {1}]  }
   0x1 LB: > { %s1237_s16 = sadd.s32 4294967295, %s1361_s15   ;;  %p1241_p0 = scmp.ge.s32.totalorder %s1361_s15, 1  ;;  %s1361_s15 = sphi %s1391_s15, %s15_s15  }
   0x2   : > { %p165_p1 = scmp.lt.s32.totalorder %s1361_s15, 3 }
   0x4   : > { %p166_p2 = pnand %p1241_p0, %p165_p1 }
   0x5   : > { %p195_p3 = scmp.lt.s32.totalorder (!%p166_p2), %s1237_s16, 1  ;;  %s1363_s21 = smov (!%p166_p2), 124  }
   0x6   : > { %169 = sbr.rel (%p166_p2) target bundleno = 595 (0x253), region = 32  ;;  %s1365_s22 = smov (!%p166_p2), 120  }
   0xb   : > { %s1728_s16 = smov (!%p195_p3, %s1237_s16), 1  ;;  %vm297_vm0 = vcmask 31744   ;;  %vm299_vm1 = vcmask 25600   ;;  %v1364_v8 = vmov 0.0   ;;  %v1247_v23 = vld [vmem:[%s1723_s1 + $0x4] sm:$0xf] }
   0xc   : > { %s1338_s17 = sshll.u32 %s1728_s16, 6  ;;  %311 = vst.msk [vmem:[#allocation2 + $0x60] sm:$0xff] %vm297_vm0, %v1364_v8  ;;  %vm371_vm2 = vcmask 1043456   ;;  %v336_v27 = vld [vmem:[%s1723_s1] sm:$0xf] }
   0xd   : > { %s1407_s20 = scalar_lea.vmem %s1722_s0, %s1338_s17  ;;  %312 = vst.msk [vmem:[#allocation2 + $0x68] sm:$0x3] %vm299_vm1, %v1364_v8  ;;  %1342 = vmatpush.msk.msra.mxu3 %vm371_vm2, %v1247_v23  ;;  %1340 = vmatpush.msk.msra.mxu1 %vm371_vm2, %v1247_v23  ;;  %v1266_v28 = vld [vmem:[%s1723_s1 + $0x8] sm:$0xf]  ;;  %v1276_v29 = vld [vmem:[%s1723_s1 + $0xc] sm:$0xf] }
   0xe   : > { %v212_v0 = vld [vmem:[%s1407_s20 + $0x18] sm:$0xff]  ;;  %v210_v1 = vld [vmem:[%s1407_s20 + $0x8] sm:$0xff]  ;;  %v215_v2 = vld [vmem:[%s1407_s20 + $0x30] sm:$0xff]  ;;  %298 = vst.msk [vmem:[#allocation2] sm:$0xff] %vm297_vm0, %v1364_v8  ;;  %1341 = vmatpush.msk.msra.mxu2 %vm371_vm2, %v1247_v23  ;;  %1248 = vmatpush.msk.msra.mxu0 %vm371_vm2, %v1247_v23 }
   0xf   : > { %231 = vrot.lane.b32.xlu0 %v212_v0, %s1363_s21  ;;  %227 = vrot.lane.b32.xlu1 %v210_v1, %s1363_s21  ;;  %v214_v3 = vld [vmem:[%s1407_s20 + $0x28] sm:$0xff]  ;;  %v213_v4 = vld [vmem:[%s1407_s20 + $0x20] sm:$0xff]  ;;  %300 = vst.msk [vmem:[#allocation2 + $0x8] sm:$0x3] %vm299_vm1, %v1364_v8 }
  0x10   : > { %237 = vrot.lane.b32.xlu2 %v215_v2, %s1363_s21  ;;  %v211_v5 = vld [vmem:[%s1407_s20 + $0x10] sm:$0xff]  ;;  %v209_v6 = vld [vmem:[%s1407_s20] sm:$0xff]  ;;  %301 = vst.msk [vmem:[#allocation2 + $0x10] sm:$0xff] %vm297_vm0, %v1364_v8  ;;  %v216_v22 = vld [vmem:[%s1407_s20 + $0x38] sm:$0xff]  ;;  %1257 = vmatpush.msk.msrb.mxu1 %vm371_vm2, %v336_v27 }
  0x11   : > { %302 = vst.msk [vmem:[#allocation2 + $0x18] sm:$0x3] %vm299_vm1, %v1364_v8  ;;  %1267 = vmatpush.msk.msrb.mxu2 %vm371_vm2, %v1266_v28  ;;  %1277 = vmatpush.msk.msrb.mxu3 %vm371_vm2, %v1276_v29  ;;  %v1286_v33 = vld [vmem:[%s1723_s1 + $0x10] sm:$0xf]  ;;  %v1306_v57 = vld [vmem:[%s1723_s1 + $0x18] sm:$0xf] }
  0x12   : > { %303 = vst.msk [vmem:[#allocation2 + $0x20] sm:$0xff] %vm297_vm0, %v1364_v8  ;;  %1287 = vmatpush.msk.msrb.mxu0 %vm371_vm2, %v1286_v33  ;;  %v1316_v58 = vld [vmem:[%s1723_s1 + $0x1c] sm:$0xf]  ;;  %v1296_v59 = vld [vmem:[%s1723_s1 + $0x14] sm:$0xf] }
  0x13   : > { %304 = vst.msk [vmem:[#allocation2 + $0x28] sm:$0x3] %vm299_vm1, %v1364_v8  ;;  %v1326_v62 = vld [vmem:[%s1723_s1 + $0x20] sm:$0xf] }
  0x14   : > { %305 = vst.msk [vmem:[#allocation2 + $0x30] sm:$0xff] %vm297_vm0, %v1364_v8 }
  0x15   : > { %306 = vst.msk [vmem:[#allocation2 + $0x38] sm:$0x3] %vm299_vm1, %v1364_v8  ;;  %v328_v52 = vld [vmem:[#allocation2] sm:$0xff] }
  0x16   : > { %307 = vst.msk [vmem:[#allocation2 + $0x40] sm:$0xff] %vm297_vm0, %v1364_v8  ;;  %v337_v26 = vld [vmem:[#allocation2 + $0x1] sm:$0xff] }
  0x17   : > { %235 = vrot.lane.b32.xlu0 %v214_v3, %s1363_s21  ;;  %233 = vrot.lane.b32.xlu1 %v213_v4, %s1363_s21  ;;  %308 = vst.msk [vmem:[#allocation2 + $0x48] sm:$0x3] %vm299_vm1, %v1364_v8  ;;  %v484_v51 = vld [vmem:[#allocation2 + $0x2] sm:$0xff] }
  0x18   : > { %229 = vrot.lane.b32.xlu2 %v211_v5, %s1363_s21  ;;  %309 = vst.msk [vmem:[#allocation2 + $0x50] sm:$0xff] %vm297_vm0, %v1364_v8  ;;  %1249 = vmatmul.msk.f32.vlgmr.msra.gmra.mxu0 %vm297_vm0, %v337_v26 }
  0x19   : > { %310 = vst.msk [vmem:[#allocation2 + $0x58] sm:$0x3] %vm299_vm1, %v1364_v8  ;;  %1327 = vmatpush.msk.msra.mxu0 %vm371_vm2, %v1326_v62 }
  0x1a   : > { %313 = vst.msk [vmem:[#allocation2 + $0x70] sm:$0xff] %vm297_vm0, %v1364_v8 }
  0x1b   : > { %314 = vst.msk [vmem:[#allocation2 + $0x78] sm:$0x3] %vm299_vm1, %v1364_v8 }
  0x1c   : > { %315 = vst.msk [vmem:[#allocation2 + $0x80] sm:$0xff] %vm297_vm0, %v1364_v8 }
  0x1d   : > { %316 = vst.msk [vmem:[#allocation2 + $0x88] sm:$0x3] %vm299_vm1, %v1364_v8 }
  0x1e   : > { %317 = vst.msk [vmem:[#allocation2 + $0x90] sm:$0xff] %vm297_vm0, %v1364_v8 }
  0x1f   : > { %225 = vrot.lane.b32.xlu0 %v209_v6, %s1363_s21  ;;  %318 = vst.msk [vmem:[#allocation2 + $0x98] sm:$0x3] %vm299_vm1, %v1364_v8 }
  0x26   : > { %v922_v29 = vld [vmem:[#allocation2 + $0x91] sm:$0xff] }
  0x6a   : > { %v238_v7 = vpop.permute.xlu2 %237 }
  0x6b   : > { %v255_v19 = vmax.f32 %v215_v2, %v238_v7 }
  0x72   : > { %v230_v13 = vpop.permute.xlu2 %229 }
  0x73   : > { %v1443_v15 = vmax.f32 %v211_v5, %v230_v13 }
  0x81   : > { %v232_v9 = vpop.permute.xlu0 %231  ;;  %v228_v10 = vpop.permute.xlu1 %227 }
  0x82   : > { %v1428_v11 = vmax.f32 %v212_v0, %v232_v9  ;;  %v1430_v12 = vmax.f32 %v210_v1, %v228_v10 }
  0x84   : > { %271 = vrot.lane.b32.xlu1 %v1428_v11, %s1365_s22  ;;  %267 = vrot.lane.b32.xlu0 %v1430_v12, %s1365_s22 }
  0x89   : > { %v236_v14 = vpop.permute.xlu0 %235  ;;  %v234_v16 = vpop.permute.xlu1 %233 }
  0x8a   : > { %v254_v17 = vmax.f32 %v214_v3, %v236_v14  ;;  %v253_v18 = vmax.f32 %v213_v4, %v234_v16 }
  0x8c   : > { %275 = vrot.lane.b32.xlu2 %v254_v17, %s1365_s22  ;;  %273 = vrot.lane.b32.xlu1 %v253_v18, %s1365_s22 }
  0x8d   : > { %269 = vrot.lane.b32.xlu0 %v1443_v15, %s1365_s22 }
  0x91   : > { %v226_v20 = vpop.permute.xlu0 %225 }
  0x92   : > { %v249_v21 = vmax.f32 %v209_v6, %v226_v20 }
  0x94   : > { %277 = vrot.lane.b32.xlu2 %v255_v19, %s1365_s22  ;;  %265 = vrot.lane.b32.xlu1 %v249_v21, %s1365_s22 }
  0x9c   : > { %239 = vrot.lane.b32.xlu2 %v216_v22, %s1363_s21 }
  0xe6   : > { %v276_v24 = vpop.permute.xlu2 %275 }
  0xe7   : > { %v294_v25 = vmax.f32 %v254_v17, %v276_v24 }
  0xe9   : > { %325 = vst.msk [vmem:[#allocation2 + $0x61] sm:$0xff] %vm297_vm0, %v294_v25 }
  0xee   : > { %v278_v30 = vpop.permute.xlu2 %277 }
  0xef   : > { %v295_v31 = vmax.f32 %v255_v19, %v278_v30  ;;  %v1008_v30 = vld [vmem:[#allocation2 + $0x92] sm:$0xff] }
  0xf0   : > { %v1482_v32 = vld [vmem:[#allocation2 + $0x61] sm:$0xff] }
  0xf1   : > { %326 = vst.msk [vmem:[#allocation2 + $0x71] sm:$0xff] %vm297_vm0, %v295_v31  ;;  %1255 = vmatmul.msk.f32.vlgmr.msra.gmra.mxu3 %vm297_vm0, %v1482_v32  ;;  %v575_v4 = vld [vmem:[#allocation2 + $0x60] sm:$0xff] }
  0xf2   : > { %1317 = vmatpush.msk.msra.mxu3 %vm371_vm2, %v1316_v58  ;;  %v490_v5 = vld [vmem:[#allocation2 + $0x62] sm:$0xff] }
  0xf6   : > { %v240_v34 = vpop.permute.xlu2 %239  ;;  %v272_v35 = vpop.permute.xlu1 %271 }
  0xf7   : > { %v1491_v36 = vmax.f32 %v216_v22, %v240_v34  ;;  %v292_v37 = vmax.f32 %v1428_v11, %v272_v35  ;;  %v268_v38 = vpop.permute.xlu0 %267 }
  0xf8   : > { %v290_v39 = vmax.f32 %v1430_v12, %v268_v38  ;;  %v1495_v40 = vld [vmem:[#allocation2 + $0x71] sm:$0xff] }
  0xf9   : > { %323 = vst.msk [vmem:[#allocation2 + $0x41] sm:$0xff] %vm297_vm0, %v292_v37  ;;  %1256 = vmatmul.msk.f32.gmra.mxu3 %vm297_vm0, %v1495_v40  ;;  %279 = vrot.lane.b32.xlu0 %v1491_v36, %s1365_s22  ;;  %v576_v6 = vld [vmem:[#allocation2 + $0x70] sm:$0xff]  ;;  %s1676_s22 = scalar_lea.vmem %s1725_s3, %s1338_s17  ;;  %s1246_s17 = sshll.u32 %s1728_s16, 1 }
  0xfa   : > { %321 = vst.msk [vmem:[#allocation2 + $0x21] sm:$0xff] %vm297_vm0, %v290_v39  ;;  %v491_v7 = vld [vmem:[#allocation2 + $0x72] sm:$0xff]  ;;  %s208_s25 = scalar_lea.vmem %s1726_s4, %s1246_s17 }
  0xfb   : > { %v836_v12 = vld [vmem:[#allocation2 + $0x90] sm:$0xff] }
  0xfe   : > { %v274_v41 = vpop.permute.xlu1 %273 }
  0xff   : > { %v293_v42 = vmax.f32 %v253_v18, %v274_v41  ;;  %v270_v43 = vpop.permute.xlu0 %269  ;;  %v392_v18 = vpop.f32.mrf.mxu0 }
 0x100   : > { %v291_v44 = vmax.f32 %v1443_v15, %v270_v43  ;;  %v1504_v45 = vld [vmem:[#allocation2 + $0x41] sm:$0xff] }
 0x101   : > { %324 = vst.msk [vmem:[#allocation2 + $0x51] sm:$0xff] %vm297_vm0, %v293_v42  ;;  %v1507_v46 = vld [vmem:[#allocation2 + $0x21] sm:$0xff]  ;;  %1253 = vmatmul.msk.f32.vlgmr.msra.gmra.mxu2 %vm297_vm0, %v1504_v45 }
 0x102   : > { %322 = vst.msk [vmem:[#allocation2 + $0x31] sm:$0xff] %vm297_vm0, %v291_v44  ;;  %1251 = vmatmul.msk.f32.vlgmr.msra.gmra.mxu1 %vm297_vm0, %v1507_v46  ;;  %v571_v56 = vld [vmem:[#allocation2 + $0x20] sm:$0xff]  ;;  %1307 = vmatpush.msk.msra.mxu2 %vm371_vm2, %v1306_v57 }
 0x103   : > { %1297 = vmatpush.msk.msra.mxu1 %vm371_vm2, %v1296_v59  ;;  %v486_v60 = vld [vmem:[#allocation2 + $0x22] sm:$0xff] }
 0x104   : > { %v573_v0 = vld [vmem:[#allocation2 + $0x40] sm:$0xff] }
 0x105   : > { %v488_v1 = vld [vmem:[#allocation2 + $0x42] sm:$0xff] }
 0x106   : > { %v266_v47 = vpop.permute.xlu1 %265 }
 0x107   : > { %v289_v48 = vmax.f32 %v249_v21, %v266_v47 }
 0x108   : > { %v1514_v49 = vld [vmem:[#allocation2 + $0x51] sm:$0xff] }
 0x109   : > { %320 = vst.msk [vmem:[#allocation2 + $0x11] sm:$0xff] %vm297_vm0, %v289_v48  ;;  %v1517_v50 = vld [vmem:[#allocation2 + $0x31] sm:$0xff]  ;;  %1254 = vmatmul.msk.f32.gmra.mxu2 %vm297_vm0, %v1514_v49 }
 0x10a   : > { %1252 = vmatmul.msk.f32.gmra.mxu1 %vm297_vm0, %v1517_v50  ;;  %v572_v61 = vld [vmem:[#allocation2 + $0x30] sm:$0xff] }
 0x10b   : > { %v487_v63 = vld [vmem:[#allocation2 + $0x32] sm:$0xff] }
 0x10c   : > { %v574_v2 = vld [vmem:[#allocation2 + $0x50] sm:$0xff] }
 0x10d   : > { %v489_v3 = vld [vmem:[#allocation2 + $0x52] sm:$0xff] }
 0x110   : > { %v338_v53 = vld [vmem:[#allocation2 + $0x11] sm:$0xff] }
 0x111   : > { %v570_v54 = vld [vmem:[#allocation2 + $0x10] sm:$0xff]  ;;  %1250 = vmatmul.msk.f32.gmra.mxu0 %vm297_vm0, %v338_v53  ;;  %1268 = vmatmul.msk.f32.vlgmr.msrb.gmra.mxu2 %vm297_vm0, %v484_v51 }
 0x112   : > { %1258 = vmatmul.msk.f32.vlgmr.msrb.gmra.mxu1 %vm297_vm0, %v328_v52  ;;  %1278 = vmatmul.msk.f32.vlgmr.msrb.gmra.mxu3 %vm297_vm0, %v570_v54  ;;  %v485_v55 = vld [vmem:[#allocation2 + $0x12] sm:$0xff] }
 0x119   : > { %1269 = vmatmul.msk.f32.gmra.mxu2 %vm297_vm0, %v485_v55  ;;  %1288 = vmatmul.msk.f32.vlgmr.msrb.gmra.mxu0 %vm297_vm0, %v338_v53 }
 0x11a   : > { %1259 = vmatmul.msk.f32.gmra.mxu1 %vm297_vm0, %v570_v54  ;;  %1279 = vmatmul.msk.f32.gmra.mxu3 %vm297_vm0, %v571_v56 }
 0x121   : > { %1270 = vmatmul.msk.f32.gmra.mxu2 %vm297_vm0, %v486_v60  ;;  %1289 = vmatmul.msk.f32.gmra.mxu0 %vm297_vm0, %v1507_v46 }
 0x122   : > { %1260 = vmatmul.msk.f32.gmra.mxu1 %vm297_vm0, %v571_v56  ;;  %1280 = vmatmul.msk.f32.gmra.mxu3 %vm297_vm0, %v572_v61 }
 0x129   : > { %1271 = vmatmul.msk.f32.gmra.mxu2 %vm297_vm0, %v487_v63  ;;  %1290 = vmatmul.msk.f32.gmra.mxu0 %vm297_vm0, %v1517_v50 }
 0x12a   : > { %1261 = vmatmul.msk.f32.gmra.mxu1 %vm297_vm0, %v572_v61  ;;  %1281 = vmatmul.msk.f32.gmra.mxu3 %vm297_vm0, %v573_v0 }
 0x131   : > { %1272 = vmatmul.msk.f32.gmra.mxu2 %vm297_vm0, %v488_v1  ;;  %1291 = vmatmul.msk.f32.gmra.mxu0 %vm297_vm0, %v1504_v45 }
 0x132   : > { %1262 = vmatmul.msk.f32.gmra.mxu1 %vm297_vm0, %v573_v0  ;;  %1282 = vmatmul.msk.f32.gmra.mxu3 %vm297_vm0, %v574_v2 }
 0x139   : > { %1273 = vmatmul.msk.f32.gmra.mxu2 %vm297_vm0, %v489_v3  ;;  %1292 = vmatmul.msk.f32.gmra.mxu0 %vm297_vm0, %v1514_v49 }
 0x13a   : > { %1263 = vmatmul.msk.f32.gmra.mxu1 %vm297_vm0, %v574_v2  ;;  %1283 = vmatmul.msk.f32.gmra.mxu3 %vm297_vm0, %v575_v4 }
 0x141   : > { %1274 = vmatmul.msk.f32.gmra.mxu2 %vm297_vm0, %v490_v5  ;;  %1293 = vmatmul.msk.f32.gmra.mxu0 %vm297_vm0, %v1482_v32 }
 0x142   : > { %1264 = vmatmul.msk.f32.gmra.mxu1 %vm297_vm0, %v575_v4  ;;  %1284 = vmatmul.msk.f32.gmra.mxu3 %vm297_vm0, %v576_v6 }
 0x149   : > { %1275 = vmatmul.msk.f32.gmra.mxu2 %vm297_vm0, %v491_v7  ;;  %1294 = vmatmul.msk.f32.gmra.mxu0 %vm297_vm0, %v1495_v40 }
 0x14a   : > { %1265 = vmatmul.msk.f32.gmra.mxu1 %vm297_vm0, %v576_v6 }
 0x151   : > { %1308 = vmatmul.msk.f32.vlgmr.msra.gmra.mxu2 %vm297_vm0, %v571_v56 }
 0x152   : > { %1298 = vmatmul.msk.f32.vlgmr.msra.gmra.mxu1 %vm297_vm0, %v485_v55 }
 0x159   : > { %1309 = vmatmul.msk.f32.gmra.mxu2 %vm297_vm0, %v572_v61 }
 0x15a   : > { %1299 = vmatmul.msk.f32.gmra.mxu1 %vm297_vm0, %v486_v60 }
 0x161   : > { %1310 = vmatmul.msk.f32.gmra.mxu2 %vm297_vm0, %v573_v0 }
 0x162   : > { %1300 = vmatmul.msk.f32.gmra.mxu1 %vm297_vm0, %v487_v63 }
 0x169   : > { %1311 = vmatmul.msk.f32.gmra.mxu2 %vm297_vm0, %v574_v2 }
 0x16a   : > { %1301 = vmatmul.msk.f32.gmra.mxu1 %vm297_vm0, %v488_v1 }
 0x16b   : > { %v280_v8 = vpop.permute.xlu0 %279 }
 0x16c   : > { %v296_v9 = vmax.f32 %v1491_v36, %v280_v8 }
 0x16e   : > { %327 = vst.msk [vmem:[#allocation2 + $0x81] sm:$0xff] %vm297_vm0, %v296_v9 }
 0x171   : > { %1312 = vmatmul.msk.f32.gmra.mxu2 %vm297_vm0, %v575_v4 }
 0x172   : > { %1302 = vmatmul.msk.f32.gmra.mxu1 %vm297_vm0, %v489_v3 }
 0x174   : > { %v1619_v21 = vpop.f32.mrf.mxu3 }
 0x175   : > { %v577_v10 = vld [vmem:[#allocation2 + $0x80] sm:$0xff] }
 0x176   : > { %v663_v11 = vld [vmem:[#allocation2 + $0x81] sm:$0xff]  ;;  %1285 = vmatmul.msk.f32.gmra.mxu3 %vm297_vm0, %v577_v10 }
 0x177   : > { %1295 = vmatmul.msk.f32.gmra.mxu0 %vm297_vm0, %v663_v11  ;;  %v749_v14 = vld [vmem:[#allocation2 + $0x82] sm:$0xff] }
 0x179   : > { %1313 = vmatmul.msk.f32.gmra.mxu2 %vm297_vm0, %v576_v6 }
 0x17a   : > { %1303 = vmatmul.msk.f32.gmra.mxu1 %vm297_vm0, %v490_v5 }
 0x17c   : > { %v1624_v25 = vpop.f32.mrf.mxu3 }
 0x17e   : > { %1318 = vmatmul.msk.f32.vlgmr.msra.gmra.mxu3 %vm297_vm0, %v1507_v46 }
 0x17f   : > { %1328 = vmatmul.msk.f32.vlgmr.msra.gmra.mxu0 %vm297_vm0, %v486_v60  ;;  %v1600_v13 = vpop.f32.mrf.mxu1 }
 0x181   : > { %1314 = vmatmul.msk.f32.gmra.mxu2 %vm297_vm0, %v577_v10  ;;  %v1668_v10 = vld [vmem:[%s1724_s2] ss:$0 sm:$0xff] }
 0x182   : > { %1304 = vmatmul.msk.f32.gmra.mxu1 %vm297_vm0, %v491_v7 }
 0x184   : > { %v1604_v15 = vpop.f32.mrf.mxu2 }
 0x186   : > { %1319 = vmatmul.msk.f32.gmra.mxu3 %vm297_vm0, %v1517_v50 }
 0x187   : > { %1329 = vmatmul.msk.f32.gmra.mxu0 %vm297_vm0, %v487_v63  ;;  %v1609_v16 = vpop.f32.mrf.mxu1 }
 0x189   : > { %1315 = vmatmul.msk.f32.gmra.mxu2 %vm297_vm0, %v836_v12 }
 0x18a   : > { %1305 = vmatmul.msk.f32.gmra.mxu1 %vm297_vm0, %v749_v14 }
 0x18c   : > { %v1611_v17 = vpop.f32.mrf.mxu2 }
 0x18e   : > { %1320 = vmatmul.msk.f32.gmra.mxu3 %vm297_vm0, %v1504_v45  ;;  %v395_v22 = vpop.f32.mrf.mxu0 }
 0x18f   : > { %1330 = vmatmul.msk.f32.gmra.mxu0 %vm297_vm0, %v488_v1  ;;  %v460_v19 = vpop.f32.mrf.mxu1 }
 0x190   : > { %v461_v55 = vadd.f32 %v460_v19, %v392_v18 }
 0x194   : > { %v538_v20 = vpop.f32.mrf.mxu2 }
 0x195   : > { %v624_v31 = vpop.f32.mrf.mxu3  ;;  %v562_v58 = vadd.f32 %v538_v20, %v461_v55 }
 0x196   : > { %1321 = vmatmul.msk.f32.gmra.mxu3 %vm297_vm0, %v1514_v49  ;;  %v710_v26 = vpop.f32.mrf.mxu0 }
 0x197   : > { %1331 = vmatmul.msk.f32.gmra.mxu0 %vm297_vm0, %v489_v3  ;;  %v463_v23 = vpop.f32.mrf.mxu1  ;;  %v648_v60 = vadd.f32 %v624_v31, %v562_v58 }
 0x198   : > { %v464_v63 = vadd.f32 %v463_v23, %v395_v22 }
 0x199   : > { %v734_v1 = vadd.f32 %v710_v26, %v648_v60 }
 0x19c   : > { %v541_v24 = vpop.f32.mrf.mxu2 }
 0x19d   : > { %v627_v35 = vpop.f32.mrf.mxu3  ;;  %v563_v2 = vadd.f32 %v541_v24, %v464_v63 }
 0x19e   : > { %1322 = vmatmul.msk.f32.gmra.mxu3 %vm297_vm0, %v1482_v32  ;;  %v713_v32 = vpop.f32.mrf.mxu0 }
 0x19f   : > { %1332 = vmatmul.msk.f32.gmra.mxu0 %vm297_vm0, %v490_v5  ;;  %v466_v27 = vpop.f32.mrf.mxu1  ;;  %v649_v4 = vadd.f32 %v627_v35, %v563_v2 }
 0x1a0   : > { %v467_v8 = vadd.f32 %v466_v27, %v1600_v13 }
 0x1a4   : > { %v544_v28 = vpop.f32.mrf.mxu2 }
 0x1a5   : > { %v630_v39 = vpop.f32.mrf.mxu3  ;;  %v564_v18 = vadd.f32 %v544_v28, %v467_v8 }
 0x1a6   : > { %1323 = vmatmul.msk.f32.gmra.mxu3 %vm297_vm0, %v1495_v40  ;;  %v716_v36 = vpop.f32.mrf.mxu0 }
 0x1a7   : > { %1333 = vmatmul.msk.f32.gmra.mxu0 %vm297_vm0, %v491_v7  ;;  %v469_v33 = vpop.f32.mrf.mxu1  ;;  %v650_v13 = vadd.f32 %v630_v39, %v564_v18 }
 0x1a8   : > { %v470_v27 = vadd.f32 %v469_v33, %v1609_v16 }
 0x1a9   : > { %v736_v31 = vadd.f32 %v716_v36, %v650_v13 }
 0x1ac   : > { %v547_v34 = vpop.f32.mrf.mxu2 }
 0x1ad   : > { %v633_v43 = vpop.f32.mrf.mxu3 }
 0x1ae   : > { %1324 = vmatmul.msk.f32.gmra.mxu3 %vm297_vm0, %v663_v11  ;;  %v1634_v40 = vpop.f32.mrf.mxu0 }
 0x1af   : > { %1334 = vmatmul.msk.f32.gmra.mxu0 %vm297_vm0, %v749_v14  ;;  %v1630_v37 = vpop.f32.mrf.mxu1  ;;  %v735_v14 = vadd.f32 %v713_v32, %v649_v4  ;;  %v565_v32 = vadd.f32 %v547_v34, %v470_v27 }
 0x1b0   : > { %v473_v60 = vadd.f32 %v1630_v37, %v1604_v15 }
 0x1b1   : > { %v651_v58 = vadd.f32 %v633_v43, %v565_v32 }
 0x1b3   : > { %v737_v34 = vadd.f32 %v1634_v40, %v651_v58 }
 0x1b4   : > { %v1632_v38 = vpop.f32.mrf.mxu2 }
 0x1b5   : > { %v1646_v47 = vpop.f32.mrf.mxu3 }
 0x1b6   : > { %1325 = vmatmul.msk.f32.gmra.mxu3 %vm297_vm0, %v922_v29  ;;  %v1640_v44 = vpop.f32.mrf.mxu0 }
 0x1b7   : > { %1335 = vmatmul.msk.f32.gmra.mxu0 %vm297_vm0, %v1008_v30  ;;  %v1636_v41 = vpop.f32.mrf.mxu1 }
 0x1bc   : > { %v1638_v42 = vpop.f32.mrf.mxu2 }
 0x1bd   : > { %v1654_v51 = vpop.f32.mrf.mxu3 }
 0x1be   : > { %v1648_v48 = vpop.f32.mrf.mxu0 }
 0x1bf   : > { %v1642_v45 = vpop.f32.mrf.mxu1 }
 0x1c0   : > { %v479_v27 = vadd.f32 %v1642_v45, %v1619_v21 }
 0x1c4   : > { %v1644_v46 = vpop.f32.mrf.mxu2 }
 0x1c5   : > { %v1658_v56 = vpop.f32.mrf.mxu3 }
 0x1c6   : > { %v1656_v52 = vpop.f32.mrf.mxu0 }
 0x1c7   : > { %v1650_v49 = vpop.f32.mrf.mxu1 }
 0x1cc   : > { %v1652_v50 = vpop.f32.mrf.mxu2 }
 0x1cf   : > { %v796_v53 = vpop.f32.mrf.mxu1 }
 0x1d0   : > { %v820_v3 = vadd.f32 %v796_v53, %v734_v1  ;;  %v566_v1 = vadd.f32 %v1632_v38, %v473_v60 }
 0x1d2   : > { %v652_v15 = vadd.f32 %v1646_v47, %v566_v1 }
 0x1d4   : > { %v883_v54 = vpop.f32.mrf.mxu2 }
 0x1d5   : > { %v907_v5 = vadd.f32 %v883_v54, %v820_v3 }
 0x1d7   : > { %v799_v59 = vpop.f32.mrf.mxu1 }
 0x1d8   : > { %v821_v20 = vadd.f32 %v799_v59, %v735_v14 }
 0x1dc   : > { %v886_v61 = vpop.f32.mrf.mxu2 }
 0x1dd   : > { %v908_v23 = vadd.f32 %v886_v61, %v821_v20 }
 0x1df   : > { %v802_v6 = vpop.f32.mrf.mxu1 }
 0x1e0   : > { %v822_v54 = vadd.f32 %v802_v6, %v736_v31 }
 0x1e4   : > { %v889_v11 = vpop.f32.mrf.mxu2 }
 0x1e5   : > { %v909_v59 = vadd.f32 %v889_v11, %v822_v54 }
 0x1e7   : > { %v805_v29 = vpop.f32.mrf.mxu1 }
 0x1e8   : > { %v823_v4 = vadd.f32 %v805_v29, %v737_v34 }
 0x1ec   : > { %v892_v53 = vpop.f32.mrf.mxu2 }
 0x1ed   : > { %v910_v37 = vadd.f32 %v892_v53, %v823_v4 }
 0x1ef   : > { %v808_v43 = vpop.f32.mrf.mxu1 }
 0x1f4   : > { %v1660_v57 = vpop.f32.mrf.mxu0  ;;  %v895_v6 = vpop.f32.mrf.mxu2 }
 0x1f7   : > { %v811_v13 = vpop.f32.mrf.mxu1 }
 0x1f9   : > { %v1662_v62 = vpop.f32.mrf.mxu3 }
 0x1fc   : > { %v1055_v0 = vpop.f32.mrf.mxu0 }
 0x1ff   : > { %v814_v21 = vpop.f32.mrf.mxu1 }
 0x201   : > { %v969_v7 = vpop.f32.mrf.mxu3 }
 0x202   : > { %v993_v9 = vadd.f32 %v969_v7, %v907_v5 }
 0x204   : > { %v1058_v12 = vpop.f32.mrf.mxu0  ;;  %v1079_v19 = vadd.f32 %v1055_v0, %v993_v9  ;;  %v476_v9 = vadd.f32 %v1636_v41, %v1611_v17  ;;  %v898_v41 = vpop.f32.mrf.mxu2 }
 0x206   : > { %v1091_v22 = vadd.f32 %v1668_v10, %v1079_v19  ;;  %v567_v14 = vadd.f32 %v1638_v42, %v476_v9 }
 0x208   : > { %v1099_v24 = vmax.f32 %v1091_v22, 0.0 }
 0x209   : > { %v972_v26 = vpop.f32.mrf.mxu3 }
 0x20a   : > { %1107 = vst [vmem:[%s1676_s22] sm:$0xff] %v1099_v24  ;;  %v994_v28 = vadd.f32 %v972_v26, %v908_v23  ;;  %v1129_v16 = vmul.f32 %v1099_v24, %v1099_v24  ;;  %v653_v23 = vadd.f32 %v1654_v51, %v567_v14 }
 0x20c   : > { %v1061_v30 = vpop.f32.mrf.mxu0  ;;  %v1080_v35 = vadd.f32 %v1058_v12, %v994_v28  ;;  %v738_v12 = vadd.f32 %v1640_v44, %v652_v15  ;;  %v739_v29 = vadd.f32 %v1648_v48, %v653_v23  ;;  %v901_v48 = vpop.f32.mrf.mxu2 }
 0x20e   : > { %v1092_v55 = vadd.f32 %v1668_v10, %v1080_v35  ;;  %v824_v22 = vadd.f32 %v808_v43, %v738_v12  ;;  %v825_v35 = vadd.f32 %v811_v13, %v739_v29 }
 0x210   : > { %v1100_v39 = vmax.f32 %v1092_v55, 0.0  ;;  %v912_v55 = vadd.f32 %v898_v41, %v825_v35 }
 0x211   : > { %v975_v61 = vpop.f32.mrf.mxu3 }
 0x212   : > { %1108 = vst [vmem:[%s1676_s22 + $0x8] sm:$0xff] %v1100_v39  ;;  %v1115_v33 = vadd.f32 %v1100_v39, %v1099_v24  ;;  %v1130_v63 = vmul.f32 %v1100_v39, %v1100_v39  ;;  %v995_v0 = vadd.f32 %v975_v61, %v909_v59  ;;  %v911_v24 = vadd.f32 %v895_v6, %v824_v22 }
 0x214   : > { %v1064_v36 = vpop.f32.mrf.mxu0  ;;  %v1137_v2 = vadd.f32 %v1130_v63, %v1129_v16  ;;  %v1081_v3 = vadd.f32 %v1061_v30, %v995_v0  ;;  %v568_v30 = vadd.f32 %v1644_v46, %v479_v27  ;;  %v482_v46 = vadd.f32 %v1650_v49, %v1624_v25  ;;  %v817_v49 = vpop.f32.mrf.mxu1 }
 0x215   : > { %v904_v6 = vpop.f32.mrf.mxu2 }
 0x216   : > { %v1093_v5 = vadd.f32 %v1668_v10, %v1081_v3  ;;  %v654_v54 = vadd.f32 %v1658_v56, %v568_v30  ;;  %v569_v63 = vadd.f32 %v1652_v50, %v482_v46 }
 0x218   : > { %v1101_v7 = vmax.f32 %v1093_v5, 0.0  ;;  %v740_v61 = vadd.f32 %v1656_v52, %v654_v54 }
 0x219   : > { %v978_v8 = vpop.f32.mrf.mxu3 }
 0x21a   : > { %1109 = vst [vmem:[%s1676_s22 + $0x10] sm:$0xff] %v1101_v7  ;;  %v1116_v11 = vadd.f32 %v1115_v33, %v1101_v7  ;;  %v1131_v40 = vmul.f32 %v1101_v7, %v1101_v7  ;;  %v996_v38 = vadd.f32 %v978_v8, %v910_v37  ;;  %v826_v56 = vadd.f32 %v814_v21, %v740_v61 }
 0x21c   : > { %v1138_v18 = vadd.f32 %v1137_v2, %v1131_v40  ;;  %v1082_v19 = vadd.f32 %v1064_v36, %v996_v38  ;;  %v1067_v20 = vpop.f32.mrf.mxu0  ;;  %v655_v36 = vadd.f32 %v1662_v62, %v569_v63  ;;  %v913_v34 = vadd.f32 %v901_v48, %v826_v56 }
 0x21e   : > { %v1094_v47 = vadd.f32 %v1668_v10, %v1082_v19  ;;  %v741_v52 = vadd.f32 %v1660_v57, %v655_v36 }
 0x220   : > { %v1102_v17 = vmax.f32 %v1094_v47, 0.0  ;;  %v827_v15 = vadd.f32 %v817_v49, %v741_v52 }
 0x221   : > { %v981_v26 = vpop.f32.mrf.mxu3 }
 0x222   : > { %1110 = vst [vmem:[%s1676_s22 + $0x18] sm:$0xff] %v1102_v17  ;;  %v1117_v44 = vadd.f32 %v1116_v11, %v1102_v17  ;;  %v1132_v42 = vmul.f32 %v1102_v17, %v1102_v17  ;;  %v997_v28 = vadd.f32 %v981_v26, %v911_v24  ;;  %v914_v62 = vadd.f32 %v904_v6, %v827_v15 }
 0x224   : > { %v1139_v31 = vadd.f32 %v1138_v18, %v1132_v42  ;;  %v1083_v32 = vadd.f32 %v1067_v20, %v997_v28  ;;  %v1070_v53 = vpop.f32.mrf.mxu0 }
 0x226   : > { %v1095_v51 = vadd.f32 %v1668_v10, %v1083_v32 }
 0x228   : > { %v1103_v58 = vmax.f32 %v1095_v51, 0.0 }
 0x229   : > { %v984_v45 = vpop.f32.mrf.mxu3 }
 0x22a   : > { %1111 = vst [vmem:[%s1676_s22 + $0x20] sm:$0xff] %v1103_v58  ;;  %v1118_v59 = vadd.f32 %v1117_v44, %v1103_v58  ;;  %v1133_v39 = vmul.f32 %v1103_v58, %v1103_v58  ;;  %v998_v60 = vadd.f32 %v984_v45, %v912_v55 }
 0x22c   : > { %v1140_v16 = vadd.f32 %v1139_v31, %v1133_v39  ;;  %v1084_v33 = vadd.f32 %v1070_v53, %v998_v60  ;;  %v1073_v2 = vpop.f32.mrf.mxu0 }
 0x22e   : > { %v1096_v0 = vadd.f32 %v1668_v10, %v1084_v33 }
 0x230   : > { %v1104_v1 = vmax.f32 %v1096_v0, 0.0 }
 0x231   : > { %v987_v3 = vpop.f32.mrf.mxu3 }
 0x232   : > { %1112 = vst [vmem:[%s1676_s22 + $0x28] sm:$0xff] %v1104_v1  ;;  %v1119_v43 = vadd.f32 %v1118_v59, %v1104_v1  ;;  %v1134_v4 = vmul.f32 %v1104_v1, %v1104_v1  ;;  %v999_v25 = vadd.f32 %v987_v3, %v913_v34 }
 0x234   : > { %v1141_v5 = vadd.f32 %v1140_v16, %v1134_v4  ;;  %v1085_v50 = vadd.f32 %v1073_v2, %v999_v25  ;;  %v1076_v9 = vpop.f32.mrf.mxu0 }
 0x236   : > { %v1097_v37 = vadd.f32 %v1668_v10, %v1085_v50 }
 0x238   : > { %v1105_v7 = vmax.f32 %v1097_v37, 0.0 }
 0x239   : > { %v990_v8 = vpop.f32.mrf.mxu3 }
 0x23a   : > { %1113 = vst [vmem:[%s1676_s22 + $0x30] sm:$0xff] %v1105_v7  ;;  %v1000_v11 = vadd.f32 %v990_v8, %v914_v62  ;;  %v1135_v38 = vmul.f32 %v1105_v7, %v1105_v7  ;;  %v1120_v57 = vadd.f32 %v1119_v43, %v1105_v7 }
 0x23c   : > { %v1086_v40 = vadd.f32 %v1076_v9, %v1000_v11  ;;  %v1142_v20 = vadd.f32 %v1141_v5, %v1135_v38 }
 0x23e   : > { %v1098_v12 = vadd.f32 %v1668_v10, %v1086_v40 }
 0x240   : > { %v1106_v14 = vmax.f32 %v1098_v12, 0.0 }
 0x242   : > { %1114 = vst [vmem:[%s1676_s22 + $0x38] sm:$0xff] %v1106_v14  ;;  %v1121_v18 = vadd.f32 %v1120_v57, %v1106_v14  ;;  %v1136_v19 = vmul.f32 %v1106_v14, %v1106_v14 }
 0x244   : > { %v1122_v22 = vrot.slane %v1121_v18, 4  ;;  %v1143_v47 = vadd.f32 %v1142_v20, %v1136_v19 }
 0x246   : > { %v1123_v13 = vadd.f32 %v1122_v22, %v1121_v18  ;;  %v1144_v23 = vrot.slane %v1143_v47, 4 }
 0x248   : > { %v1124_v24 = vrot.slane %v1123_v13, 2  ;;  %v1145_v17 = vadd.f32 %v1144_v23, %v1143_v47 }
 0x24a   : > { %v1125_v41 = vadd.f32 %v1124_v24, %v1123_v13  ;;  %v1146_v26 = vrot.slane %v1145_v17, 2 }
 0x24c   : > { %v1126_v27 = vrot.slane %v1125_v41, 1  ;;  %v1147_v44 = vadd.f32 %v1146_v26, %v1145_v17 }
 0x24e   : > { %v1127_v10 = vadd.f32 %v1126_v27, %v1125_v41  ;;  %v1148_v42 = vrot.slane %v1147_v44, 1 }
 0x250   : > { %1128 = vst [vmem:[%s208_s25] sm:$0x1] %v1127_v10  ;;  %v1149_v28 = vadd.f32 %v1148_v42, %v1147_v44 }
 0x252   : > { %1150 = vst [vmem:[%s208_s25 + $0x1] sm:$0x1] %v1149_v28 }
 0x253 PF: > { %s15_s15 = sadd.s32 1, %s1361_s15  }
 0x254   : > { %p12_p4 = scmp.ge.s32.totalorder %s15_s15, 4  }
 0x256   :  { %14 = sbr.rel (!%p12_p4) target bundleno = 1 (0x1), region = 84 }

// kernel: down_forward.4
= control target key start
LH: loop header
LB: loop body
LE: loop exit
PB: predicated region body
PF: predicated region fallthrough
CT: control target
= control target key end

     0   :  { %s1354_s21 = smov 0   ;;  %s2075_s0 = inlined_call_operand.vmem [shape: f32[2,8,8,128], index: 0, kind: input, shape index: {}]   ;;  %s2076_s1 = inlined_call_operand.vmem [shape: f32[1,128], index: 1, kind: input, shape index: {}]   ;;  %s2077_s2 = inlined_call_operand.vmem [shape: f32[1,128], index: 2, kind: input, shape index: {}]   ;;  %s2078_s3 = inlined_call_operand.vmem [shape: f32[9,128,128], index: 3, kind: input, shape index: {}]   ;;  %s2079_s4 = inlined_call_operand.vmem [shape: f32[1,128], index: 4, kind: input, shape index: {}]   ;;  %s2080_s5 = inlined_call_operand.vmem [shape: f32[2,64,128], index: 5, kind: output, shape index: {0}]   ;;  %s2081_s6 = inlined_call_operand.vmem [shape: f32[2,2,128], index: 6, kind: output, shape index: {1}]  }
   0x1 LB: > { %s1124_s22 = sadd.s32 4294967295, %s1316_s21   ;;  %p1128_p0 = scmp.ge.s32.totalorder %s1316_s21, 1  ;;  %s1316_s21 = sphi %s1354_s21, %s17_s21  }
   0x2   : > { %p215_p1 = scmp.lt.s32.totalorder %s1316_s21, 3 }
   0x4   : > { %p216_p2 = pnand %p1128_p0, %p215_p1 }
   0x5   : > { %p249_p3 = scmp.lt.s32.totalorder (!%p216_p2), %s1124_s22, 1 }
   0x6   : > { %219 = sbr.rel (%p216_p2) target bundleno = 350 (0x15e), region = 40 }
   0xb   : > { %v1149_v0 = vld [vmem:[%s2078_s3 + $0xf8] sm:$0xff]  ;;  %v1148_v1 = vld [vmem:[%s2078_s3 + $0xf0] sm:$0xff]  ;;  %v1318_v2 = vmov 0.0   ;;  %v1147_v3 = vld [vmem:[%s2078_s3 + $0xe8] sm:$0xff]  ;;  %s2083_s22 = smov (!%p249_p3, %s1124_s22), 1 }
   0xc   : > { %1266 = vmatpush.msra.mxu1 %v1149_v0  ;;  %373 = vmatpush.msra.mxu0 %v1149_v0  ;;  %303 = vst [vmem:[#allocation2 + $0x40] sm:$0xff] %v1318_v2  ;;  %v1165_v4 = vld [vmem:[%s2078_s3 + $0x178] sm:$0xff]  ;;  %v1164_v5 = vld [vmem:[%s2078_s3 + $0x170] sm:$0xff]  ;;  %v1146_v6 = vld [vmem:[%s2078_s3 + $0xe0] sm:$0xff]  ;;  %s1264_s11 = sshll.u32 %s2083_s22, 6 }
   0xd   : > { %304 = vst [vmem:[#allocation2 + $0x48] sm:$0x3] %v1318_v2  ;;  %480 = vmatpush.msra.mxu2 %v1165_v4  ;;  %v1163_v7 = vld [vmem:[%s2078_s3 + $0x168] sm:$0xff]  ;;  %s1395_s16 = scalar_lea.vmem %s2075_s0, %s1264_s11  ;;  %v1145_v8 = vld [vmem:[%s2078_s3 + $0xd8] sm:$0xff]  ;;  %v1144_v9 = vld [vmem:[%s2078_s3 + $0xd0] sm:$0xff]  ;;  %s2037_s14 = scalar_lea.vmem %s2080_s5, %s1264_s11 }
   0xe   : > { %1267 = vmatpush.msra.mxu1 %v1148_v1  ;;  %374 = vmatpush.msra.mxu0 %v1148_v1  ;;  %295 = vst [vmem:[#allocation2] sm:$0xff] %v1318_v2  ;;  %v1162_v10 = vld [vmem:[%s2078_s3 + $0x160] sm:$0xff]  ;;  %v1161_v11 = vld [vmem:[%s2078_s3 + $0x158] sm:$0xff]  ;;  %v1143_v16 = vld [vmem:[%s2078_s3 + $0xc8] sm:$0xff]  ;;  %s1133_s11 = sshll.u32 %s2083_s22, 1 }
   0xf   : > { %296 = vst [vmem:[#allocation2 + $0x8] sm:$0x3] %v1318_v2  ;;  %481 = vmatpush.msra.mxu2 %v1164_v5  ;;  %v1181_v12 = vld [vmem:[%s2078_s3 + $0x1f8] sm:$0xff]  ;;  %v1420_v14 = vld [vmem:[%s2076_s1] ss:$0 sm:$0xff]  ;;  %v1180_v17 = vld [vmem:[%s2078_s3 + $0x1f0] sm:$0xff]  ;;  %s262_s18 = scalar_lea.vmem %s2081_s6, %s1133_s11 }
  0x10   : > { %1268 = vmatpush.msra.mxu1 %v1147_v3  ;;  %375 = vmatpush.msra.mxu0 %v1147_v3  ;;  %297 = vst [vmem:[#allocation2 + $0x10] sm:$0xff] %v1318_v2  ;;  %v266_v13 = vld [vmem:[%s1395_s16 + $0x18] sm:$0xff]  ;;  %v1425_v15 = vld [vmem:[%s2077_s2] ss:$0 sm:$0xff]  ;;  %v1160_v18 = vld [vmem:[%s2078_s3 + $0x150] sm:$0xff] }
  0x11   : > { %298 = vst [vmem:[#allocation2 + $0x18] sm:$0x3] %v1318_v2  ;;  %482 = vmatpush.msra.mxu2 %v1163_v7  ;;  %554 = vmatpush.msra.mxu3 %v1181_v12  ;;  %v278_v19 = vmul.f32 %v1420_v14, %v266_v13  ;;  %v1179_v20 = vld [vmem:[%s2078_s3 + $0x1e8] sm:$0xff]  ;;  %v1142_v21 = vld [vmem:[%s2078_s3 + $0xc0] sm:$0xff]  ;;  %v1141_v25 = vld [vmem:[%s2078_s3 + $0xb8] sm:$0xff] }
  0x12   : > { %1269 = vmatpush.msra.mxu1 %v1146_v6  ;;  %376 = vmatpush.msra.mxu0 %v1146_v6  ;;  %299 = vst [vmem:[#allocation2 + $0x20] sm:$0xff] %v1318_v2  ;;  %v1159_v22 = vld [vmem:[%s2078_s3 + $0x148] sm:$0xff]  ;;  %v1178_v24 = vld [vmem:[%s2078_s3 + $0x1e0] sm:$0xff]  ;;  %v1177_v28 = vld [vmem:[%s2078_s3 + $0x1d8] sm:$0xff] }
  0x13   : > { %300 = vst [vmem:[#allocation2 + $0x28] sm:$0x3] %v1318_v2  ;;  %483 = vmatpush.msra.mxu2 %v1162_v10  ;;  %555 = vmatpush.msra.mxu3 %v1180_v17  ;;  %v1450_v23 = vadd.f32 %v1425_v15, %v278_v19  ;;  %v267_v26 = vld [vmem:[%s1395_s16 + $0x20] sm:$0xff]  ;;  %v1140_v29 = vld [vmem:[%s2078_s3 + $0xb0] sm:$0xff]  ;;  %v1157_v30 = vld [vmem:[%s2078_s3 + $0x138] sm:$0xff] }
  0x14   : > { %1270 = vmatpush.msra.mxu1 %v1145_v8  ;;  %377 = vmatpush.msra.mxu0 %v1145_v8  ;;  %301 = vst [vmem:[#allocation2 + $0x30] sm:$0xff] %v1318_v2  ;;  %v1158_v27 = vld [vmem:[%s2078_s3 + $0x140] sm:$0xff]  ;;  %v279_v31 = vmul.f32 %v1420_v14, %v267_v26  ;;  %v1176_v32 = vld [vmem:[%s2078_s3 + $0x1d0] sm:$0xff]  ;;  %v1139_v33 = vld [vmem:[%s2078_s3 + $0xa8] sm:$0xff] }
  0x15   : > { %302 = vst [vmem:[#allocation2 + $0x38] sm:$0x3] %v1318_v2  ;;  %484 = vmatpush.msra.mxu2 %v1161_v11  ;;  %556 = vmatpush.msra.mxu3 %v1179_v20  ;;  %v1156_v34 = vld [vmem:[%s2078_s3 + $0x130] sm:$0xff]  ;;  %v1175_v35 = vld [vmem:[%s2078_s3 + $0x1c8] sm:$0xff]  ;;  %v263_v36 = vld [vmem:[%s1395_s16] sm:$0xff] }
  0x16   : > { %1271 = vmatpush.msra.mxu1 %v1144_v9  ;;  %378 = vmatpush.msra.mxu0 %v1144_v9  ;;  %305 = vst [vmem:[#allocation2 + $0x50] sm:$0xff] %v1318_v2  ;;  %v1138_v37 = vld [vmem:[%s2078_s3 + $0xa0] sm:$0xff]  ;;  %v275_v38 = vmul.f32 %v1420_v14, %v263_v36  ;;  %v268_v39 = vld [vmem:[%s1395_s16 + $0x28] sm:$0xff]  ;;  %v1503_v41 = vadd.f32 %v1425_v15, %v279_v31  ;;  %v1137_v44 = vld [vmem:[%s2078_s3 + $0x98] sm:$0xff] }
  0x17   : > { %306 = vst [vmem:[#allocation2 + $0x58] sm:$0x3] %v1318_v2  ;;  %485 = vmatpush.msra.mxu2 %v1160_v18  ;;  %557 = vmatpush.msra.mxu3 %v1178_v24  ;;  %v1155_v40 = vld [vmem:[%s2078_s3 + $0x128] sm:$0xff]  ;;  %v1174_v42 = vld [vmem:[%s2078_s3 + $0x1c0] sm:$0xff]  ;;  %v280_v43 = vmul.f32 %v1420_v14, %v268_v39  ;;  %v1173_v47 = vld [vmem:[%s2078_s3 + $0x1b8] sm:$0xff] }
  0x18   : > { %1272 = vmatpush.msra.mxu1 %v1143_v16  ;;  %379 = vmatpush.msra.mxu0 %v1143_v16  ;;  %307 = vst [vmem:[#allocation2 + $0x60] sm:$0xff] %v1318_v2  ;;  %v1514_v45 = vadd.f32 %v1425_v15, %v275_v38  ;;  %v1154_v46 = vld [vmem:[%s2078_s3 + $0x120] sm:$0xff]  ;;  %v1136_v49 = vld [vmem:[%s2078_s3 + $0x90] sm:$0xff]  ;;  %v1153_v50 = vld [vmem:[%s2078_s3 + $0x118] sm:$0xff] }
  0x19   : > { %319 = vst [vmem:[#allocation2 + $0x41] sm:$0xff] %v1450_v23  ;;  %486 = vmatpush.msra.mxu2 %v1159_v22  ;;  %558 = vmatpush.msra.mxu3 %v1177_v28  ;;  %v1524_v48 = vadd.f32 %v1425_v15, %v280_v43  ;;  %v1172_v51 = vld [vmem:[%s2078_s3 + $0x1b0] sm:$0xff]  ;;  %v264_v52 = vld [vmem:[%s1395_s16 + $0x8] sm:$0xff]  ;;  %v1134_v59 = vld [vmem:[%s2078_s3 + $0x80] sm:$0xff] }
  0x1a   : > { %1273 = vmatpush.msra.mxu1 %v1142_v21  ;;  %380 = vmatpush.msra.mxu0 %v1142_v21  ;;  %308 = vst [vmem:[#allocation2 + $0x68] sm:$0x3] %v1318_v2  ;;  %v1135_v53 = vld [vmem:[%s2078_s3 + $0x88] sm:$0xff]  ;;  %v276_v54 = vmul.f32 %v1420_v14, %v264_v52  ;;  %v269_v55 = vld [vmem:[%s1395_s16 + $0x30] sm:$0xff]  ;;  %v347_v63 = vld [vmem:[%s2078_s3 + $0x78] sm:$0xff] }
  0x1b   : > { %309 = vst [vmem:[#allocation2 + $0x70] sm:$0xff] %v1318_v2  ;;  %487 = vmatpush.msra.mxu2 %v1158_v27  ;;  %559 = vmatpush.msra.mxu3 %v1176_v32  ;;  %v1152_v56 = vld [vmem:[%s2078_s3 + $0x110] sm:$0xff]  ;;  %v1171_v57 = vld [vmem:[%s2078_s3 + $0x1a8] sm:$0xff]  ;;  %v281_v58 = vmul.f32 %v1420_v14, %v269_v55  ;;  %v1197_v0 = vld [vmem:[%s2078_s3 + $0x278] sm:$0xff] }
  0x1c   : > { %1274 = vmatpush.msra.mxu1 %v1141_v25  ;;  %381 = vmatpush.msra.mxu0 %v1141_v25  ;;  %310 = vst [vmem:[#allocation2 + $0x78] sm:$0x3] %v1318_v2  ;;  %v1554_v60 = vadd.f32 %v1425_v15, %v276_v54  ;;  %v348_v61 = vld [vmem:[#allocation2 + $0x1] sm:$0xff]  ;;  %v265_v1 = vld [vmem:[%s1395_s16 + $0x10] sm:$0xff]  ;;  %v1169_v9 = vld [vmem:[%s2078_s3 + $0x198] sm:$0xff] }
  0x1d   : > { %311 = vst [vmem:[#allocation2 + $0x80] sm:$0xff] %v1318_v2  ;;  %488 = vmatpush.msra.mxu2 %v1157_v30  ;;  %560 = vmatpush.msra.mxu3 %v1175_v35  ;;  %v1557_v62 = vadd.f32 %v1425_v15, %v281_v58  ;;  %v1151_v3 = vld [vmem:[%s2078_s3 + $0x108] sm:$0xff]  ;;  %v1170_v4 = vld [vmem:[%s2078_s3 + $0x1a0] sm:$0xff]  ;;  %v277_v5 = vmul.f32 %v1420_v14, %v265_v1  ;;  %v346_v6 = vld [vmem:[%s2078_s3 + $0x70] sm:$0xff] }
  0x1e   : > { %1275 = vmatpush.msra.mxu1 %v1140_v29  ;;  %382 = vmatpush.msra.mxu0 %v1140_v29  ;;  %312 = vst [vmem:[#allocation2 + $0x88] sm:$0x3] %v1318_v2  ;;  %v1196_v7 = vld [vmem:[%s2078_s3 + $0x270] sm:$0xff]  ;;  %v1150_v8 = vld [vmem:[%s2078_s3 + $0x100] sm:$0xff]  ;;  %v345_v11 = vld [vmem:[%s2078_s3 + $0x68] sm:$0xff] }
  0x1f   : > { %313 = vst [vmem:[#allocation2 + $0x90] sm:$0xff] %v1318_v2  ;;  %489 = vmatpush.msra.mxu2 %v1156_v34  ;;  %561 = vmatpush.msra.mxu3 %v1174_v42  ;;  %v1589_v10 = vadd.f32 %v1425_v15, %v277_v5  ;;  %v1195_v12 = vld [vmem:[%s2078_s3 + $0x268] sm:$0xff]  ;;  %v1168_v16 = vld [vmem:[%s2078_s3 + $0x190] sm:$0xff]  ;;  %v344_v17 = vld [vmem:[%s2078_s3 + $0x60] sm:$0xff] }
  0x20   : > { %1276 = vmatpush.msra.mxu1 %v1139_v33  ;;  %383 = vmatpush.msra.mxu0 %v1139_v33  ;;  %314 = vst [vmem:[#allocation2 + $0x98] sm:$0x3] %v1318_v2  ;;  %v455_v13 = vld [vmem:[#allocation2 + $0x2] sm:$0xff]  ;;  %v343_v19 = vld [vmem:[%s2078_s3 + $0x58] sm:$0xff]  ;;  %v342_v24 = vld [vmem:[%s2078_s3 + $0x50] sm:$0xff] }
  0x21   : > { %320 = vst [vmem:[#allocation2 + $0x51] sm:$0xff] %v1503_v41  ;;  %490 = vmatpush.msra.mxu2 %v1155_v40  ;;  %562 = vmatpush.msra.mxu3 %v1173_v47  ;;  %v1194_v18 = vld [vmem:[%s2078_s3 + $0x260] sm:$0xff]  ;;  %v1193_v20 = vld [vmem:[%s2078_s3 + $0x258] sm:$0xff]  ;;  %v1167_v22 = vld [vmem:[%s2078_s3 + $0x188] sm:$0xff] }
  0x22   : > { %1277 = vmatpush.msra.mxu1 %v1138_v37  ;;  %384 = vmatpush.msra.mxu0 %v1138_v37  ;;  %316 = vst [vmem:[#allocation2 + $0x11] sm:$0xff] %v1514_v45  ;;  %v1229_v21 = vld [vmem:[%s2078_s3 + $0x378] sm:$0xff]  ;;  %v1192_v25 = vld [vmem:[%s2078_s3 + $0x250] sm:$0xff]  ;;  %v1166_v27 = vld [vmem:[%s2078_s3 + $0x180] sm:$0xff] }
  0x23   : > { %321 = vst [vmem:[#allocation2 + $0x61] sm:$0xff] %v1524_v48  ;;  %491 = vmatpush.msra.mxu2 %v1154_v46  ;;  %563 = vmatpush.msra.mxu3 %v1172_v51  ;;  %v1228_v26 = vld [vmem:[%s2078_s3 + $0x370] sm:$0xff]  ;;  %v341_v28 = vld [vmem:[%s2078_s3 + $0x48] sm:$0xff]  ;;  %v340_v32 = vld [vmem:[%s2078_s3 + $0x40] sm:$0xff] }
  0x24   : > { %1278 = vmatpush.msra.mxu1 %v1137_v44  ;;  %385 = vmatpush.msra.mxu0 %v1137_v44  ;;  %317 = vst [vmem:[#allocation2 + $0x21] sm:$0xff] %v1554_v60  ;;  %v1191_v29 = vld [vmem:[%s2078_s3 + $0x248] sm:$0xff]  ;;  %v1190_v33 = vld [vmem:[%s2078_s3 + $0x240] sm:$0xff]  ;;  %v339_v34 = vld [vmem:[%s2078_s3 + $0x38] sm:$0xff] }
  0x25   : > { %492 = vmatpush.msra.mxu2 %v1153_v50  ;;  %564 = vmatpush.msra.mxu3 %v1171_v57  ;;  %322 = vst [vmem:[#allocation2 + $0x71] sm:$0xff] %v1557_v62  ;;  %v1189_v35 = vld [vmem:[%s2078_s3 + $0x238] sm:$0xff]  ;;  %v1227_v36 = vld [vmem:[%s2078_s3 + $0x368] sm:$0xff]  ;;  %v338_v38 = vld [vmem:[%s2078_s3 + $0x30] sm:$0xff] }
  0x26   : > { %1279 = vmatpush.msra.mxu1 %v1136_v49  ;;  %386 = vmatpush.msra.mxu0 %v1136_v49  ;;  %318 = vst [vmem:[#allocation2 + $0x31] sm:$0xff] %v1589_v10  ;;  %v1245_v37 = vld [vmem:[%s2078_s3 + $0x3f8] sm:$0xff]  ;;  %v1188_v39 = vld [vmem:[%s2078_s3 + $0x230] sm:$0xff]  ;;  %v1226_v40 = vld [vmem:[%s2078_s3 + $0x360] sm:$0xff] }
  0x27   : > { %493 = vmatpush.msra.mxu2 %v1152_v56  ;;  %565 = vmatpush.msra.mxu3 %v1170_v4  ;;  %v1244_v42 = vld [vmem:[%s2078_s3 + $0x3f0] sm:$0xff]  ;;  %v337_v43 = vld [vmem:[%s2078_s3 + $0x28] sm:$0xff]  ;;  %v336_v49 = vld [vmem:[%s2078_s3 + $0x20] sm:$0xff] }
  0x28   : > { %1280 = vmatpush.msra.mxu1 %v1135_v53  ;;  %387 = vmatpush.msra.mxu0 %v1135_v53  ;;  %v1187_v44 = vld [vmem:[%s2078_s3 + $0x228] sm:$0xff]  ;;  %v1186_v50 = vld [vmem:[%s2078_s3 + $0x220] sm:$0xff]  ;;  %v335_v51 = vld [vmem:[%s2078_s3 + $0x18] sm:$0xff] }
  0x29   : > { %494 = vmatpush.msra.mxu2 %v1151_v3  ;;  %566 = vmatpush.msra.mxu3 %v1169_v9  ;;  %v1639_v30 = vld [vmem:[#allocation2 + $0x12] sm:$0xff]  ;;  %v1243_v54 = vld [vmem:[%s2078_s3 + $0x3e8] sm:$0xff]  ;;  %v1242_v58 = vld [vmem:[%s2078_s3 + $0x3e0] sm:$0xff] }
  0x2a   : > { %1281 = vmatpush.msra.mxu1 %v1134_v59  ;;  %388 = vmatpush.msra.mxu0 %v1134_v59  ;;  %v1641_v31 = vld [vmem:[#allocation2 + $0x10] sm:$0xff]  ;;  %v1185_v52 = vld [vmem:[%s2078_s3 + $0x218] sm:$0xff]  ;;  %v333_v59 = vld [vmem:[%s2078_s3 + $0x8] sm:$0xff] }
  0x2b   : > { %401 = vmatmul.f32.vlgmr.msra.gmra.mxu1 %v1450_v23  ;;  %389 = vmatmul.f32.vlgmr.msra.gmra.mxu0 %v348_v61  ;;  %v1683_v46 = vld [vmem:[#allocation2 + $0x22] sm:$0xff]  ;;  %v1225_v53 = vld [vmem:[%s2078_s3 + $0x358] sm:$0xff]  ;;  %v334_v55 = vld [vmem:[%s2078_s3 + $0x10] sm:$0xff] }
  0x2c   : > { %414 = vmatpush.msrb.mxu1 %v347_v63  ;;  %628 = vmatpush.msrb.mxu0 %v1197_v0  ;;  %v1685_v47 = vld [vmem:[#allocation2 + $0x20] sm:$0xff]  ;;  %v1184_v56 = vld [vmem:[%s2078_s3 + $0x210] sm:$0xff]  ;;  %v1183_v61 = vld [vmem:[%s2078_s3 + $0x208] sm:$0xff] }
  0x2d   : > { %495 = vmatpush.msra.mxu2 %v1150_v8  ;;  %567 = vmatpush.msra.mxu3 %v1168_v16  ;;  %v1224_v57 = vld [vmem:[%s2078_s3 + $0x350] sm:$0xff]  ;;  %v332_v1 = vld [vmem:[%s2078_s3] sm:$0xff]  ;;  %v1213_v4 = vld [vmem:[%s2078_s3 + $0x2f8] sm:$0xff] }
  0x2e   : > { %415 = vmatpush.msrb.mxu1 %v346_v6  ;;  %629 = vmatpush.msrb.mxu0 %v1196_v7  ;;  %v1727_v63 = vld [vmem:[#allocation2 + $0x32] sm:$0xff]  ;;  %v1182_v3 = vld [vmem:[%s2078_s3 + $0x200] sm:$0xff]  ;;  %v1223_v5 = vld [vmem:[%s2078_s3 + $0x348] sm:$0xff] }
  0x2f   : > { %496 = vmatmul.f32.vlgmr.msra.gmra.mxu2 %v455_v13  ;;  %568 = vmatpush.msra.mxu3 %v1167_v22  ;;  %v1729_v0 = vld [vmem:[#allocation2 + $0x30] sm:$0xff]  ;;  %v1241_v6 = vld [vmem:[%s2078_s3 + $0x3d8] sm:$0xff]  ;;  %v1222_v9 = vld [vmem:[%s2078_s3 + $0x340] sm:$0xff] }
  0x30   : > { %416 = vmatpush.msrb.mxu1 %v345_v11  ;;  %630 = vmatpush.msrb.mxu0 %v1195_v12  ;;  %v1751_v7 = vld [vmem:[%s2078_s3 + $0x478] sm:$0xff]  ;;  %v1212_v8 = vld [vmem:[%s2078_s3 + $0x2f0] sm:$0xff]  ;;  %v1211_v13 = vld [vmem:[%s2078_s3 + $0x2e8] sm:$0xff] }
  0x31   : > { %777 = vmatpush.msrb.mxu2 %v1229_v21  ;;  %569 = vmatpush.msra.mxu3 %v1166_v27  ;;  %v1240_v11 = vld [vmem:[%s2078_s3 + $0x3d0] sm:$0xff]  ;;  %v1776_v16 = vld [vmem:[#allocation2 + $0x42] sm:$0xff] }
  0x32   : > { %417 = vmatpush.msrb.mxu1 %v344_v17  ;;  %631 = vmatpush.msrb.mxu0 %v1194_v18  ;;  %v1767_v12 = vld [vmem:[%s2078_s3 + $0x470] sm:$0xff]  ;;  %v1778_v17 = vld [vmem:[#allocation2 + $0x40] sm:$0xff]  ;;  %v1239_v21 = vld [vmem:[%s2078_s3 + $0x3c8] sm:$0xff] }
  0x33   : > { %404 = vmatmul.f32.gmra.mxu1 %v1503_v41  ;;  %392 = vmatmul.f32.gmra.mxu0 %v1514_v45  ;;  %v1210_v18 = vld [vmem:[%s2078_s3 + $0x2e0] sm:$0xff]  ;;  %v1219_v22 = vld [vmem:[%s2078_s3 + $0x328] sm:$0xff] }
  0x34   : > { %418 = vmatpush.msrb.mxu1 %v343_v19  ;;  %632 = vmatpush.msrb.mxu0 %v1193_v20  ;;  %v1220_v19 = vld [vmem:[%s2078_s3 + $0x330] sm:$0xff]  ;;  %v1209_v20 = vld [vmem:[%s2078_s3 + $0x2d8] sm:$0xff]  ;;  %v1218_v27 = vld [vmem:[%s2078_s3 + $0x320] sm:$0xff] }
  0x35   : > { %778 = vmatpush.msrb.mxu2 %v1228_v26  ;;  %570 = vmatmul.f32.vlgmr.msra.gmra.mxu3 %v1641_v31  ;;  %v1238_v26 = vld [vmem:[%s2078_s3 + $0x3c0] sm:$0xff] }
  0x36   : > { %419 = vmatpush.msrb.mxu1 %v342_v24  ;;  %633 = vmatpush.msrb.mxu0 %v1192_v25  ;;  %v1801_v24 = vld [vmem:[%s2078_s3 + $0x468] sm:$0xff]  ;;  %v1208_v25 = vld [vmem:[%s2078_s3 + $0x2d0] sm:$0xff] }
  0x37   : > { %499 = vmatmul.f32.gmra.mxu2 %v1639_v30  ;;  %851 = vmatpush.msrb.mxu3 %v1245_v37 }
  0x38   : > { %420 = vmatpush.msrb.mxu1 %v341_v28  ;;  %634 = vmatpush.msrb.mxu0 %v1191_v29  ;;  %v1817_v28 = vld [vmem:[%s2078_s3 + $0x460] sm:$0xff]  ;;  %v1207_v29 = vld [vmem:[%s2078_s3 + $0x2c8] sm:$0xff] }
  0x39   : > { %779 = vmatpush.msrb.mxu2 %v1227_v36  ;;  %852 = vmatpush.msrb.mxu3 %v1244_v42  ;;  %v1217_v36 = vld [vmem:[%s2078_s3 + $0x318] sm:$0xff]  ;;  %v1216_v42 = vld [vmem:[%s2078_s3 + $0x310] sm:$0xff] }
  0x3a   : > { %421 = vmatpush.msrb.mxu1 %v340_v32  ;;  %635 = vmatpush.msrb.mxu0 %v1190_v33  ;;  %v1826_v32 = vld [vmem:[#allocation2 + $0x52] sm:$0xff] }
  0x3b   : > { %407 = vmatmul.f32.gmra.mxu1 %v1524_v48  ;;  %395 = vmatmul.f32.gmra.mxu0 %v1554_v60  ;;  %v1828_v33 = vld [vmem:[#allocation2 + $0x50] sm:$0xff] }
  0x3c   : > { %422 = vmatpush.msrb.mxu1 %v339_v34  ;;  %636 = vmatpush.msrb.mxu0 %v1189_v35  ;;  %v270_v34 = vld [vmem:[%s1395_s16 + $0x38] sm:$0xff]  ;;  %v1206_v35 = vld [vmem:[%s2078_s3 + $0x2c0] sm:$0xff] }
  0x3d   : > { %780 = vmatpush.msrb.mxu2 %v1226_v40  ;;  %573 = vmatmul.f32.gmra.mxu3 %v1685_v47  ;;  %v282_v37 = vmul.f32 %v1420_v14, %v270_v34  ;;  %v1853_v14 = vld [vmem:[%s2078_s3 + $0x458] sm:$0xff] }
  0x3e   : > { %423 = vmatpush.msrb.mxu1 %v338_v38  ;;  %637 = vmatpush.msrb.mxu0 %v1188_v39  ;;  %v1205_v38 = vld [vmem:[%s2078_s3 + $0x2b8] sm:$0xff]  ;;  %v1236_v39 = vld [vmem:[%s2078_s3 + $0x3b0] sm:$0xff] }
  0x3f   : > { %502 = vmatmul.f32.gmra.mxu2 %v1683_v46  ;;  %853 = vmatpush.msrb.mxu3 %v1243_v54  ;;  %v1848_v40 = vadd.f32 %v1425_v15, %v282_v37  ;;  %v1204_v15 = vld [vmem:[%s2078_s3 + $0x2b0] sm:$0xff]  ;;  %v1255_v54 = vld [vmem:[%s2078_s3 + $0x448] sm:$0xff] }
  0x40   : > { %424 = vmatpush.msrb.mxu1 %v337_v43  ;;  %638 = vmatpush.msrb.mxu0 %v1187_v44  ;;  %v1235_v43 = vld [vmem:[%s2078_s3 + $0x3a8] sm:$0xff]  ;;  %v1870_v44 = vld [vmem:[%s2078_s3 + $0x450] sm:$0xff] }
  0x41   : > { %781 = vmatpush.msrb.mxu2 %v1225_v53  ;;  %854 = vmatpush.msrb.mxu3 %v1242_v58  ;;  %323 = vst [vmem:[#allocation2 + $0x81] sm:$0xff] %v1848_v40  ;;  %v1884_v53 = vld [vmem:[#allocation2 + $0x60] sm:$0xff] }
  0x42   : > { %425 = vmatpush.msrb.mxu1 %v336_v49  ;;  %639 = vmatpush.msrb.mxu0 %v1186_v50  ;;  %v1215_v49 = vld [vmem:[%s2078_s3 + $0x308] sm:$0xff]  ;;  %v1254_v58 = vld [vmem:[%s2078_s3 + $0x440] sm:$0xff] }
  0x43   : > { %410 = vmatmul.f32.gmra.mxu1 %v1557_v62  ;;  %398 = vmatmul.f32.gmra.mxu0 %v1589_v10  ;;  %v1203_v50 = vld [vmem:[%s2078_s3 + $0x2a8] sm:$0xff] }
  0x44   : > { %426 = vmatpush.msrb.mxu1 %v335_v51  ;;  %640 = vmatpush.msrb.mxu0 %v1185_v52  ;;  %v1234_v51 = vld [vmem:[%s2078_s3 + $0x3a0] sm:$0xff] }
  0x45   : > { %782 = vmatpush.msrb.mxu2 %v1224_v57  ;;  %576 = vmatmul.f32.gmra.mxu3 %v1729_v0  ;;  %v1882_v52 = vld [vmem:[#allocation2 + $0x62] sm:$0xff]  ;;  %v1233_v57 = vld [vmem:[%s2078_s3 + $0x398] sm:$0xff] }
  0x46   : > { %427 = vmatpush.msrb.mxu1 %v334_v55  ;;  %641 = vmatpush.msrb.mxu0 %v1184_v56  ;;  %v1202_v55 = vld [vmem:[%s2078_s3 + $0x2a0] sm:$0xff] }
  0x47   : > { %505 = vmatmul.f32.gmra.mxu2 %v1727_v63  ;;  %855 = vmatpush.msrb.mxu3 %v1241_v6  ;;  %v1214_v56 = vld [vmem:[%s2078_s3 + $0x300] sm:$0xff]  ;;  %v1923_v6 = vld [vmem:[#allocation2 + $0x70] sm:$0xff] }
  0x48   : > { %428 = vmatpush.msrb.mxu1 %v333_v59  ;;  %642 = vmatpush.msrb.mxu0 %v1183_v61  ;;  %v1201_v59 = vld [vmem:[%s2078_s3 + $0x298] sm:$0xff]  ;;  %v1232_v61 = vld [vmem:[%s2078_s3 + $0x390] sm:$0xff] }
  0x49   : > { %783 = vmatpush.msrb.mxu2 %v1223_v5  ;;  %856 = vmatpush.msrb.mxu3 %v1240_v11  ;;  %v1921_v5 = vld [vmem:[#allocation2 + $0x72] sm:$0xff]  ;;  %v1251_v11 = vld [vmem:[%s2078_s3 + $0x428] sm:$0xff] }
  0x4a   : > { %429 = vmatpush.msrb.mxu1 %v332_v1  ;;  %643 = vmatpush.msrb.mxu0 %v1182_v3  ;;  %v1253_v1 = vld [vmem:[%s2078_s3 + $0x438] sm:$0xff]  ;;  %v1200_v3 = vld [vmem:[%s2078_s3 + $0x290] sm:$0xff] }
  0x4b   : > { %430 = vmatmul.f32.vlgmr.msrb.gmra.mxu1 %v1318_v2  ;;  %644 = vmatmul.f32.vlgmr.msrb.gmra.mxu0 %v1514_v45  ;;  %v1221_v45 = vld [vmem:[%s2078_s3 + $0x338] sm:$0xff] }
  0x4c   : > { %702 = vmatpush.msra.mxu1 %v1213_v4  ;;  %925 = vmatpush.msra.mxu0 %v1751_v7  ;;  %v1231_v4 = vld [vmem:[%s2078_s3 + $0x388] sm:$0xff] }
  0x4d   : > { %784 = vmatpush.msrb.mxu2 %v1222_v9  ;;  %579 = vmatmul.f32.gmra.mxu3 %v1778_v17  ;;  %v1199_v9 = vld [vmem:[%s2078_s3 + $0x288] sm:$0xff] }
  0x4e   : > { %703 = vmatpush.msra.mxu1 %v1212_v8  ;;  %926 = vmatpush.msra.mxu0 %v1767_v12  ;;  %v1252_v8 = vld [vmem:[%s2078_s3 + $0x430] sm:$0xff] }
  0x4f   : > { %785 = vmatpush.msrb.mxu2 %v1221_v45  ;;  %857 = vmatpush.msrb.mxu3 %v1239_v21  ;;  %v536_v45 = vld [vmem:[#allocation2 + $0x80] sm:$0xff] }
  0x50   : > { %704 = vmatpush.msra.mxu1 %v1211_v13  ;;  %508 = vmatmul.f32.gmra.mxu2 %v1776_v16  ;;  %v1198_v13 = vld [vmem:[%s2078_s3 + $0x280] sm:$0xff] }
  0x51   : > { %786 = vmatpush.msrb.mxu2 %v1220_v19  ;;  %927 = vmatpush.msra.mxu0 %v1801_v24  ;;  %v1248_v19 = vld [vmem:[%s2078_s3 + $0x410] sm:$0xff] }
  0x52   : > { %705 = vmatpush.msra.mxu1 %v1210_v18  ;;  %858 = vmatpush.msrb.mxu3 %v1238_v26  ;;  %v1249_v18 = vld [vmem:[%s2078_s3 + $0x418] sm:$0xff] }
  0x53   : > { %433 = vmatmul.f32.gmra.mxu1 %v1641_v31  ;;  %647 = vmatmul.f32.gmra.mxu0 %v1554_v60  ;;  %v1237_v31 = vld [vmem:[%s2078_s3 + $0x3b8] sm:$0xff] }
  0x54   : > { %706 = vmatpush.msra.mxu1 %v1209_v20  ;;  %787 = vmatpush.msrb.mxu2 %v1219_v22  ;;  %v1247_v20 = vld [vmem:[%s2078_s3 + $0x408] sm:$0xff] }
  0x55   : > { %928 = vmatpush.msra.mxu0 %v1817_v28  ;;  %859 = vmatpush.msrb.mxu3 %v1237_v31 }
  0x56   : > { %707 = vmatpush.msra.mxu1 %v1208_v25  ;;  %788 = vmatpush.msrb.mxu2 %v1218_v27 }
  0x57   : > { %582 = vmatmul.f32.gmra.mxu3 %v1828_v33  ;;  %929 = vmatpush.msra.mxu0 %v1853_v14 }
  0x58   : > { %708 = vmatpush.msra.mxu1 %v1207_v29  ;;  %511 = vmatmul.f32.gmra.mxu2 %v1826_v32 }
  0x59   : > { %789 = vmatpush.msrb.mxu2 %v1217_v36  ;;  %860 = vmatpush.msrb.mxu3 %v1236_v39 }
  0x5a   : > { %709 = vmatpush.msra.mxu1 %v1206_v35  ;;  %930 = vmatpush.msra.mxu0 %v1870_v44 }
  0x5b   : > { %436 = vmatmul.f32.gmra.mxu1 %v1685_v47  ;;  %650 = vmatmul.f32.gmra.mxu0 %v1589_v10 }
  0x5c   : > { %710 = vmatpush.msra.mxu1 %v1205_v38  ;;  %790 = vmatpush.msrb.mxu2 %v1216_v42 }
  0x5d   : > { %861 = vmatpush.msrb.mxu3 %v1235_v43  ;;  %931 = vmatpush.msra.mxu0 %v1255_v54 }
  0x5e   : > { %711 = vmatpush.msra.mxu1 %v1204_v15  ;;  %791 = vmatpush.msrb.mxu2 %v1215_v49 }
  0x5f   : > { %862 = vmatpush.msrb.mxu3 %v1234_v51  ;;  %932 = vmatpush.msra.mxu0 %v1254_v58 }
  0x60   : > { %712 = vmatpush.msra.mxu1 %v1203_v50  ;;  %514 = vmatmul.f32.gmra.mxu2 %v1882_v52 }
  0x61   : > { %585 = vmatmul.f32.gmra.mxu3 %v1884_v53  ;;  %792 = vmatpush.msrb.mxu2 %v1214_v56 }
  0x62   : > { %713 = vmatpush.msra.mxu1 %v1202_v55  ;;  %863 = vmatpush.msrb.mxu3 %v1233_v57 }
  0x63   : > { %439 = vmatmul.f32.gmra.mxu1 %v1729_v0  ;;  %653 = vmatmul.f32.gmra.mxu0 %v1450_v23 }
  0x64   : > { %714 = vmatpush.msra.mxu1 %v1201_v59  ;;  %1282 = vmatpush.msra.mxu2 %v1751_v7  ;;  %v1230_v7 = vld [vmem:[%s2078_s3 + $0x380] sm:$0xff] }
  0x65   : > { %864 = vmatpush.msrb.mxu3 %v1232_v61  ;;  %933 = vmatpush.msra.mxu0 %v1253_v1 }
  0x66   : > { %715 = vmatpush.msra.mxu1 %v1200_v3  ;;  %1283 = vmatpush.msra.mxu2 %v1767_v12  ;;  %v1250_v12 = vld [vmem:[%s2078_s3 + $0x420] sm:$0xff] }
  0x67   : > { %865 = vmatpush.msrb.mxu3 %v1231_v4  ;;  %934 = vmatpush.msra.mxu0 %v1252_v8 }
  0x68   : > { %517 = vmatmul.f32.gmra.mxu2 %v1921_v5  ;;  %716 = vmatpush.msra.mxu1 %v1199_v9 }
  0x69   : > { %588 = vmatmul.f32.gmra.mxu3 %v1923_v6  ;;  %1284 = vmatpush.msra.mxu2 %v1801_v24 }
  0x6a   : > { %866 = vmatpush.msrb.mxu3 %v1230_v7  ;;  %935 = vmatpush.msra.mxu0 %v1251_v11 }
  0x6b   : > { %442 = vmatmul.f32.gmra.mxu1 %v1778_v17  ;;  %656 = vmatmul.f32.gmra.mxu0 %v1503_v41 }
  0x6c   : > { %717 = vmatpush.msra.mxu1 %v1198_v13  ;;  %1285 = vmatpush.msra.mxu2 %v1817_v28 }
  0x6d   : > { %936 = vmatpush.msra.mxu0 %v1250_v12 }
  0x6e   : > { %1286 = vmatpush.msra.mxu2 %v1853_v14 }
  0x6f   : > { %937 = vmatpush.msra.mxu0 %v1249_v18 }
  0x70   : > { %793 = vmatmul.f32.vlgmr.msrb.gmra.mxu2 %v1685_v47  ;;  %v1246_v47 = vld [vmem:[%s2078_s3 + $0x400] sm:$0xff] }
  0x71   : > { %591 = vmatmul.f32.gmra.mxu3 %v536_v45  ;;  %1287 = vmatpush.msra.mxu2 %v1870_v44 }
  0x72   : > { %938 = vmatpush.msra.mxu0 %v1248_v19 }
  0x73   : > { %445 = vmatmul.f32.gmra.mxu1 %v1828_v33  ;;  %659 = vmatmul.f32.gmra.mxu0 %v1524_v48 }
  0x74   : > { %1288 = vmatpush.msra.mxu2 %v1255_v54  ;;  %939 = vmatpush.msra.mxu0 %v1247_v20 }
  0x76   : > { %1289 = vmatpush.msra.mxu2 %v1254_v58  ;;  %940 = vmatpush.msra.mxu0 %v1246_v47 }
  0x78   : > { %1290 = vmatpush.msra.mxu2 %v1253_v1 }
  0x79   : > { %796 = vmatmul.f32.gmra.mxu2 %v1729_v0  ;;  %867 = vmatmul.f32.vlgmr.msrb.gmra.mxu3 %v1554_v60  ;;  %v833_v60 = vld [vmem:[#allocation2 + $0x91] sm:$0xff] }
  0x7a   : > { %1291 = vmatpush.msra.mxu2 %v1252_v8 }
  0x7b   : > { %448 = vmatmul.f32.gmra.mxu1 %v1884_v53  ;;  %662 = vmatmul.f32.gmra.mxu0 %v1557_v62 }
  0x7c   : > { %1292 = vmatpush.msra.mxu2 %v1251_v11 }
  0x7e   : > { %1293 = vmatpush.msra.mxu2 %v1250_v12 }
  0x80   : > { %1294 = vmatpush.msra.mxu2 %v1249_v18 }
  0x81   : > { %799 = vmatmul.f32.gmra.mxu2 %v1778_v17  ;;  %870 = vmatmul.f32.gmra.mxu3 %v1589_v10 }
  0x82   : > { %1295 = vmatpush.msra.mxu2 %v1248_v19 }
  0x83   : > { %451 = vmatmul.f32.gmra.mxu1 %v1923_v6  ;;  %665 = vmatmul.f32.gmra.mxu0 %v1848_v40 }
  0x84   : > { %1296 = vmatpush.msra.mxu2 %v1247_v20 }
  0x86   : > { %1297 = vmatpush.msra.mxu2 %v1246_v47 }
  0x89   : > { %802 = vmatmul.f32.gmra.mxu2 %v1828_v33  ;;  %873 = vmatmul.f32.gmra.mxu3 %v1450_v23 }
  0x8b   : > { %718 = vmatmul.f32.vlgmr.msra.gmra.mxu1 %v1639_v30  ;;  %941 = vmatmul.f32.vlgmr.msra.gmra.mxu0 %v1683_v46 }
  0x91   : > { %805 = vmatmul.f32.gmra.mxu2 %v1884_v53  ;;  %876 = vmatmul.f32.gmra.mxu3 %v1503_v41 }
  0x93   : > { %721 = vmatmul.f32.gmra.mxu1 %v1683_v46  ;;  %944 = vmatmul.f32.gmra.mxu0 %v1727_v63  ;;  %v907_v46 = vld [vmem:[#allocation2 + $0x92] sm:$0xff] }
  0x99   : > { %808 = vmatmul.f32.gmra.mxu2 %v1923_v6  ;;  %879 = vmatmul.f32.gmra.mxu3 %v1524_v48  ;;  %v906_v48 = vld [vmem:[#allocation2 + $0x82] sm:$0xff] }
  0x9b   : > { %724 = vmatmul.f32.gmra.mxu1 %v1727_v63  ;;  %947 = vmatmul.f32.gmra.mxu0 %v1776_v16 }
  0xa1   : > { %811 = vmatmul.f32.gmra.mxu2 %v536_v45  ;;  %882 = vmatmul.f32.gmra.mxu3 %v1557_v62 }
  0xa3   : > { %727 = vmatmul.f32.gmra.mxu1 %v1776_v16  ;;  %950 = vmatmul.f32.gmra.mxu0 %v1826_v32 }
  0xa8   : > { %v402_v23 = vpop.f32.mrf.mxu1  ;;  %v390_v41 = vpop.f32.mrf.mxu0 }
  0xa9   : > { %814 = vmatmul.f32.gmra.mxu2 %v1318_v2  ;;  %885 = vmatmul.f32.gmra.mxu3 %v1848_v40 }
  0xab   : > { %730 = vmatmul.f32.gmra.mxu1 %v1826_v32  ;;  %953 = vmatmul.f32.gmra.mxu0 %v1882_v52 }
  0xb0   : > { %v405_v10 = vpop.f32.mrf.mxu1  ;;  %v393_v30 = vpop.f32.mrf.mxu0 }
  0xb1   : > { %959 = vmatmul.f32.vlgmr.msra.gmra.mxu2 %v906_v48  ;;  %888 = vmatmul.f32.gmra.mxu3 %v833_v60 }
  0xb2   : > { %v497_v62 = vpop.f32.mrf.mxu2 }
  0xb3   : > { %733 = vmatmul.f32.gmra.mxu1 %v1882_v52  ;;  %956 = vmatmul.f32.gmra.mxu0 %v1921_v5 }
  0xb8   : > { %v408_v63 = vpop.f32.mrf.mxu1  ;;  %v396_v2 = vpop.f32.mrf.mxu0 }
  0xb9   : > { %962 = vmatmul.f32.gmra.mxu2 %v907_v46  ;;  %v571_v16 = vpop.f32.mrf.mxu3 }
  0xba   : > { %v500_v0 = vpop.f32.mrf.mxu2 }
  0xbb   : > { %736 = vmatmul.f32.gmra.mxu1 %v1921_v5 }
  0xc0   : > { %v411_v17 = vpop.f32.mrf.mxu1  ;;  %v399_v21 = vpop.f32.mrf.mxu0 }
  0xc1   : > { %v574_v24 = vpop.f32.mrf.mxu3 }
  0xc2   : > { %v503_v22 = vpop.f32.mrf.mxu2 }
  0xc3   : > { %739 = vmatmul.f32.gmra.mxu1 %v906_v48 }
  0xc8   : > { %v431_v25 = vpop.f32.mrf.mxu1  ;;  %v645_v26 = vpop.f32.mrf.mxu0 }
  0xc9   : > { %v432_v27 = vadd.f32 %v431_v25, %v390_v41  ;;  %v577_v31 = vpop.f32.mrf.mxu3 }
  0xca   : > { %v506_v29 = vpop.f32.mrf.mxu2 }
  0xcb   : > { %v521_v28 = vadd.f32 %v497_v62, %v432_v27 }
  0xcd   : > { %v595_v19 = vadd.f32 %v571_v16, %v521_v28 }
  0xcf   : > { %v669_v41 = vadd.f32 %v645_v26, %v595_v19 }
  0xd0   : > { %v434_v32 = vpop.f32.mrf.mxu1  ;;  %v648_v33 = vpop.f32.mrf.mxu0 }
  0xd1   : > { %v435_v34 = vadd.f32 %v434_v32, %v393_v30  ;;  %v1998_v37 = vpop.f32.mrf.mxu3 }
  0xd3   : > { %v522_v35 = vadd.f32 %v500_v0, %v435_v34  ;;  %v509_v36 = vpop.f32.mrf.mxu2 }
  0xd5   : > { %v596_v30 = vadd.f32 %v574_v24, %v522_v35 }
  0xd7   : > { %v670_v0 = vadd.f32 %v648_v33, %v596_v30 }
  0xd8   : > { %v437_v38 = vpop.f32.mrf.mxu1  ;;  %v651_v39 = vpop.f32.mrf.mxu0 }
  0xd9   : > { %v438_v40 = vadd.f32 %v437_v38, %v396_v2  ;;  %v2029_v2 = vld [vmem:[%s2079_s4] ss:$0 sm:$0xff] }
  0xda   : > { %v2000_v15 = vpop.f32.mrf.mxu3 }
  0xdb   : > { %v523_v14 = vadd.f32 %v503_v22, %v438_v40  ;;  %v512_v42 = vpop.f32.mrf.mxu2 }
  0xdd   : > { %v597_v24 = vadd.f32 %v577_v31, %v523_v14 }
  0xdf   : > { %v671_v33 = vadd.f32 %v651_v39, %v597_v24 }
  0xe0   : > { %v440_v43 = vpop.f32.mrf.mxu1  ;;  %v2002_v44 = vpop.f32.mrf.mxu0 }
  0xe1   : > { %v441_v49 = vadd.f32 %v440_v43, %v399_v21 }
  0xe3   : > { %v524_v50 = vadd.f32 %v506_v29, %v441_v49  ;;  %v515_v51 = vpop.f32.mrf.mxu2 }
  0xe4   : > { %v2004_v52 = vpop.f32.mrf.mxu3 }
  0xe5   : > { %v598_v43 = vadd.f32 %v1998_v37, %v524_v50 }
  0xe7   : > { %v672_v39 = vadd.f32 %v2002_v44, %v598_v43 }
  0xe8   : > { %v443_v53 = vpop.f32.mrf.mxu1  ;;  %v2006_v54 = vpop.f32.mrf.mxu0 }
  0xe9   : > { %v444_v55 = vadd.f32 %v443_v53, %v402_v23 }
  0xeb   : > { %v2008_v56 = vadd.f32 %v509_v36, %v444_v55  ;;  %v518_v57 = vpop.f32.mrf.mxu2 }
  0xec   : > { %v2010_v58 = vpop.f32.mrf.mxu3 }
  0xed   : > { %v599_v37 = vadd.f32 %v2000_v15, %v2008_v56 }
  0xef   : > { %v673_v44 = vadd.f32 %v2006_v54, %v599_v37 }
  0xf0   : > { %v446_v59 = vpop.f32.mrf.mxu1  ;;  %v2012_v61 = vpop.f32.mrf.mxu0 }
  0xf1   : > { %v447_v1 = vadd.f32 %v446_v59, %v405_v10 }
  0xf3   : > { %v2014_v3 = vadd.f32 %v512_v42, %v447_v1  ;;  %v794_v4 = vpop.f32.mrf.mxu2 }
  0xf4   : > { %v2016_v5 = vpop.f32.mrf.mxu3 }
  0xf5   : > { %v600_v15 = vadd.f32 %v2004_v52, %v2014_v3 }
  0xf7   : > { %v674_v54 = vadd.f32 %v2012_v61, %v600_v15 }
  0xf8   : > { %v449_v6 = vpop.f32.mrf.mxu1  ;;  %v2018_v8 = vpop.f32.mrf.mxu0 }
  0xf9   : > { %v450_v9 = vadd.f32 %v449_v6, %v408_v63 }
  0xfb   : > { %v2020_v7 = vadd.f32 %v515_v51, %v450_v9 }
  0xfc   : > { %v797_v11 = vpop.f32.mrf.mxu2  ;;  %v868_v13 = vpop.f32.mrf.mxu3 }
  0xfd   : > { %v601_v52 = vadd.f32 %v2010_v58, %v2020_v7 }
  0xff   : > { %v675_v61 = vadd.f32 %v2018_v8, %v601_v52 }
 0x100   : > { %v452_v12 = vpop.f32.mrf.mxu1  ;;  %v2022_v45 = vpop.f32.mrf.mxu0 }
 0x101   : > { %v453_v18 = vadd.f32 %v452_v12, %v411_v17 }
 0x103   : > { %v2024_v20 = vadd.f32 %v518_v57, %v453_v18 }
 0x104   : > { %v800_v47 = vpop.f32.mrf.mxu2  ;;  %v871_v23 = vpop.f32.mrf.mxu3 }
 0x105   : > { %v602_v58 = vadd.f32 %v2016_v5, %v2024_v20 }
 0x107   : > { %v676_v8 = vadd.f32 %v2022_v45, %v602_v58 }
 0x108   : > { %v719_v48 = vpop.f32.mrf.mxu1  ;;  %v942_v60 = vpop.f32.mrf.mxu0 }
 0x109   : > { %v743_v10 = vadd.f32 %v719_v48, %v669_v41 }
 0x10b   : > { %v818_v62 = vadd.f32 %v794_v4, %v743_v10 }
 0x10c   : > { %v803_v46 = vpop.f32.mrf.mxu2  ;;  %v874_v17 = vpop.f32.mrf.mxu3 }
 0x10d   : > { %v892_v63 = vadd.f32 %v868_v13, %v818_v62 }
 0x10f   : > { %v966_v16 = vadd.f32 %v942_v60, %v892_v63 }
 0x110   : > { %v722_v21 = vpop.f32.mrf.mxu1  ;;  %v945_v22 = vpop.f32.mrf.mxu0 }
 0x111   : > { %v978_v25 = vadd.f32 %v2029_v2, %v966_v16  ;;  %v744_v26 = vadd.f32 %v722_v21, %v670_v0 }
 0x113   : > { %v986_v27 = vmax.f32 %v978_v25, 0.0  ;;  %v819_v28 = vadd.f32 %v797_v11, %v744_v26 }
 0x114   : > { %v806_v29 = vpop.f32.mrf.mxu2  ;;  %v877_v42 = vpop.f32.mrf.mxu3 }
 0x115   : > { %994 = vst [vmem:[%s2037_s14] sm:$0xff] %v986_v27  ;;  %v893_v32 = vadd.f32 %v871_v23, %v819_v28  ;;  %v1016_v31 = vmul.f32 %v986_v27, %v986_v27 }
 0x117   : > { %v967_v34 = vadd.f32 %v945_v22, %v893_v32 }
 0x118   : > { %v725_v35 = vpop.f32.mrf.mxu1  ;;  %v948_v36 = vpop.f32.mrf.mxu0 }
 0x119   : > { %v979_v38 = vadd.f32 %v2029_v2, %v967_v34  ;;  %v745_v40 = vadd.f32 %v725_v35, %v671_v33 }
 0x11b   : > { %v987_v49 = vmax.f32 %v979_v38, 0.0  ;;  %v820_v51 = vadd.f32 %v800_v47, %v745_v40 }
 0x11c   : > { %v809_v53 = vpop.f32.mrf.mxu2  ;;  %v880_v12 = vpop.f32.mrf.mxu3 }
 0x11d   : > { %995 = vst [vmem:[%s2037_s14 + $0x8] sm:$0xff] %v987_v49  ;;  %v1002_v14 = vadd.f32 %v987_v49, %v986_v27  ;;  %v1017_v55 = vmul.f32 %v987_v49, %v987_v49  ;;  %v894_v57 = vadd.f32 %v874_v17, %v820_v51 }
 0x11f   : > { %v1024_v59 = vadd.f32 %v1017_v55, %v1016_v31  ;;  %v968_v1 = vadd.f32 %v948_v36, %v894_v57 }
 0x120   : > { %v728_v4 = vpop.f32.mrf.mxu1  ;;  %v951_v6 = vpop.f32.mrf.mxu0 }
 0x121   : > { %v980_v9 = vadd.f32 %v2029_v2, %v968_v1  ;;  %v746_v11 = vadd.f32 %v728_v4, %v672_v39 }
 0x123   : > { %v988_v50 = vmax.f32 %v980_v9, 0.0  ;;  %v821_v13 = vadd.f32 %v803_v46, %v746_v11 }
 0x124   : > { %v812_v23 = vpop.f32.mrf.mxu2  ;;  %v883_v17 = vpop.f32.mrf.mxu3 }
 0x125   : > { %996 = vst [vmem:[%s2037_s14 + $0x10] sm:$0xff] %v988_v50  ;;  %v1003_v18 = vadd.f32 %v1002_v14, %v988_v50  ;;  %v1018_v19 = vmul.f32 %v988_v50, %v988_v50  ;;  %v895_v47 = vadd.f32 %v877_v42, %v821_v13 }
 0x127   : > { %v1025_v41 = vadd.f32 %v1024_v59, %v1018_v19  ;;  %v969_v48 = vadd.f32 %v951_v6, %v895_v47 }
 0x128   : > { %v731_v60 = vpop.f32.mrf.mxu1  ;;  %v954_v62 = vpop.f32.mrf.mxu0 }
 0x129   : > { %v981_v10 = vadd.f32 %v2029_v2, %v969_v48  ;;  %v747_v30 = vadd.f32 %v731_v60, %v673_v44 }
 0x12b   : > { %v989_v56 = vmax.f32 %v981_v10, 0.0  ;;  %v822_v46 = vadd.f32 %v806_v29, %v747_v30 }
 0x12c   : > { %v815_v26 = vpop.f32.mrf.mxu2  ;;  %v886_v40 = vpop.f32.mrf.mxu3 }
 0x12d   : > { %997 = vst [vmem:[%s2037_s14 + $0x18] sm:$0xff] %v989_v56  ;;  %v1004_v63 = vadd.f32 %v1003_v18, %v989_v56  ;;  %v1019_v0 = vmul.f32 %v989_v56, %v989_v56  ;;  %v896_v16 = vadd.f32 %v880_v12, %v822_v46 }
 0x12f   : > { %v1026_v21 = vadd.f32 %v1025_v41, %v1019_v0  ;;  %v970_v22 = vadd.f32 %v954_v62, %v896_v16 }
 0x130   : > { %v734_v25 = vpop.f32.mrf.mxu1  ;;  %v957_v29 = vpop.f32.mrf.mxu0 }
 0x131   : > { %v982_v24 = vadd.f32 %v2029_v2, %v970_v22  ;;  %v748_v27 = vadd.f32 %v734_v25, %v674_v54 }
 0x133   : > { %v990_v3 = vmax.f32 %v982_v24, 0.0  ;;  %v823_v28 = vadd.f32 %v809_v53, %v748_v27 }
 0x134   : > { %v960_v49 = vpop.f32.mrf.mxu2  ;;  %v889_v4 = vpop.f32.mrf.mxu3 }
 0x135   : > { %998 = vst [vmem:[%s2037_s14 + $0x20] sm:$0xff] %v990_v3  ;;  %v1005_v32 = vadd.f32 %v1004_v63, %v990_v3  ;;  %v1020_v33 = vmul.f32 %v990_v3, %v990_v3  ;;  %v897_v34 = vadd.f32 %v883_v17, %v823_v28 }
 0x137   : > { %v1027_v35 = vadd.f32 %v1026_v21, %v1020_v33  ;;  %v971_v36 = vadd.f32 %v957_v29, %v897_v34 }
 0x138   : > { %v737_v38 = vpop.f32.mrf.mxu1 }
 0x139   : > { %v983_v42 = vadd.f32 %v2029_v2, %v971_v36  ;;  %v749_v43 = vadd.f32 %v737_v38, %v675_v61 }
 0x13b   : > { %v991_v7 = vmax.f32 %v983_v42, 0.0  ;;  %v824_v51 = vadd.f32 %v812_v23, %v749_v43 }
 0x13c   : > { %v963_v5 = vpop.f32.mrf.mxu2 }
 0x13d   : > { %999 = vst [vmem:[%s2037_s14 + $0x28] sm:$0xff] %v991_v7  ;;  %v1006_v53 = vadd.f32 %v1005_v32, %v991_v7  ;;  %v1021_v31 = vmul.f32 %v991_v7, %v991_v7  ;;  %v898_v14 = vadd.f32 %v886_v40, %v824_v51 }
 0x13f   : > { %v1028_v55 = vadd.f32 %v1027_v35, %v1021_v31  ;;  %v972_v57 = vadd.f32 %v960_v49, %v898_v14 }
 0x140   : > { %v740_v39 = vpop.f32.mrf.mxu1 }
 0x141   : > { %v984_v59 = vadd.f32 %v2029_v2, %v972_v57  ;;  %v750_v1 = vadd.f32 %v740_v39, %v676_v8 }
 0x143   : > { %v992_v6 = vmax.f32 %v984_v59, 0.0  ;;  %v825_v9 = vadd.f32 %v815_v26, %v750_v1 }
 0x145   : > { %1000 = vst [vmem:[%s2037_s14 + $0x30] sm:$0xff] %v992_v6  ;;  %v1007_v20 = vadd.f32 %v1006_v53, %v992_v6  ;;  %v1022_v11 = vmul.f32 %v992_v6, %v992_v6  ;;  %v899_v37 = vadd.f32 %v889_v4, %v825_v9 }
 0x147   : > { %v1029_v50 = vadd.f32 %v1028_v55, %v1022_v11  ;;  %v973_v13 = vadd.f32 %v963_v5, %v899_v37 }
 0x149   : > { %v985_v45 = vadd.f32 %v2029_v2, %v973_v13 }
 0x14b   : > { %v993_v12 = vmax.f32 %v985_v45, 0.0 }
 0x14d   : > { %1001 = vst [vmem:[%s2037_s14 + $0x38] sm:$0xff] %v993_v12  ;;  %v1008_v18 = vadd.f32 %v1007_v20, %v993_v12  ;;  %v1023_v19 = vmul.f32 %v993_v12, %v993_v12 }
 0x14f   : > { %v1009_v47 = vrot.slane %v1008_v18, 4  ;;  %v1030_v23 = vadd.f32 %v1029_v50, %v1023_v19 }
 0x151   : > { %v1010_v44 = vadd.f32 %v1009_v47, %v1008_v18  ;;  %v1031_v41 = vrot.slane %v1030_v23, 4 }
 0x153   : > { %v1011_v48 = vrot.slane %v1010_v44, 2  ;;  %v1032_v60 = vadd.f32 %v1031_v41, %v1030_v23 }
 0x155   : > { %v1012_v10 = vadd.f32 %v1011_v48, %v1010_v44  ;;  %v1033_v30 = vrot.slane %v1032_v60, 2 }
 0x157   : > { %v1013_v62 = vrot.slane %v1012_v10, 1  ;;  %v1034_v15 = vadd.f32 %v1033_v30, %v1032_v60 }
 0x159   : > { %v1014_v2 = vadd.f32 %v1013_v62, %v1012_v10  ;;  %v1035_v56 = vrot.slane %v1034_v15, 1 }
 0x15b   : > { %1015 = vst [vmem:[%s262_s18] sm:$0x1] %v1014_v2  ;;  %v1036_v46 = vadd.f32 %v1035_v56, %v1034_v15 }
 0x15d   : > { %1037 = vst [vmem:[%s262_s18 + $0x1] sm:$0x1] %v1036_v46 }
 0x15e PF: > { %s17_s21 = sadd.s32 1, %s1316_s21  }
 0x15f   : > { %p14_p4 = scmp.ge.s32.totalorder %s17_s21, 4  }
 0x161   :  { %16 = sbr.rel (!%p14_p4) target bundleno = 1 (0x1), region = 92 }

// kernel: down_forward.5
= control target key start
LH: loop header
LB: loop body
LE: loop exit
PB: predicated region body
PF: predicated region fallthrough
CT: control target
= control target key end

     0   :  { %s317_s12 = smov 0   ;;  %s340_s0 = inlined_call_operand.vmem [shape: f32[2,64,128], index: 0, kind: input, shape index: {}]   ;;  %s341_s1 = inlined_call_operand.vmem [shape: f32[1,128], index: 1, kind: input, shape index: {}]   ;;  %s342_s2 = inlined_call_operand.vmem [shape: f32[1,128], index: 2, kind: input, shape index: {}]   ;;  %s343_s3 = inlined_call_operand.vmem [shape: f32[2,64,128], index: 3, kind: output, shape index: {}]  }
   0x1 LB: > { %s266_s13 = sadd.s32 4294967295, %s295_s12   ;;  %p270_p0 = scmp.ge.s32.totalorder %s295_s12, 1  ;;  %s295_s12 = sphi %s317_s12, %s13_s12  }
   0x2   : > { %p137_p1 = scmp.lt.s32.totalorder %s295_s12, 3 }
   0x4   : > { %p138_p2 = pnand %p270_p0, %p137_p1 }
   0x5   : > { %p161_p3 = scmp.lt.s32.totalorder (!%p138_p2), %s266_s13, 1 }
   0x6   : > { %141 = sbr.rel (%p138_p2) target bundleno = 27 (0x1b), region = 32 }
   0xb   : > { %s345_s13 = smov (!%p161_p3, %s266_s13), 1  ;;  %v287_v0 = vld [vmem:[%s341_s1] ss:$0 sm:$0xff] }
   0xc   : > { %s277_s16 = sshll.u32 %s345_s13, 6  ;;  %v288_v1 = vld [vmem:[%s342_s2] ss:$0 sm:$0xff] }
   0xd   : > { %s165_s19 = scalar_lea.vmem %s340_s0, %s277_s16  ;;  %s170_s24 = scalar_lea.vmem %s343_s3, %s277_s16 }
   0xe   : > { %v171_v2 = vld [vmem:[%s165_s19] sm:$0xff]  ;;  %v172_v3 = vld [vmem:[%s165_s19 + $0x8] sm:$0xff]  ;;  %v173_v4 = vld [vmem:[%s165_s19 + $0x10] sm:$0xff] }
   0xf   : > { %v183_v5 = vmul.f32 %v287_v0, %v171_v2  ;;  %v184_v6 = vmul.f32 %v287_v0, %v172_v3  ;;  %v185_v7 = vmul.f32 %v287_v0, %v173_v4  ;;  %v174_v8 = vld [vmem:[%s165_s19 + $0x18] sm:$0xff]  ;;  %v175_v9 = vld [vmem:[%s165_s19 + $0x20] sm:$0xff]  ;;  %v176_v10 = vld [vmem:[%s165_s19 + $0x28] sm:$0xff] }
  0x10   : > { %v186_v11 = vmul.f32 %v287_v0, %v174_v8  ;;  %v187_v12 = vmul.f32 %v287_v0, %v175_v9  ;;  %v188_v13 = vmul.f32 %v287_v0, %v176_v10  ;;  %v177_v14 = vld [vmem:[%s165_s19 + $0x30] sm:$0xff]  ;;  %v178_v15 = vld [vmem:[%s165_s19 + $0x38] sm:$0xff] }
  0x11   : > { %v195_v16 = vadd.f32 %v288_v1, %v183_v5  ;;  %v196_v17 = vadd.f32 %v288_v1, %v184_v6  ;;  %v197_v18 = vadd.f32 %v288_v1, %v185_v7  ;;  %v189_v19 = vmul.f32 %v287_v0, %v177_v14 }
  0x12   : > { %v198_v20 = vadd.f32 %v288_v1, %v186_v11  ;;  %v190_v21 = vmul.f32 %v287_v0, %v178_v15  ;;  %v199_v22 = vadd.f32 %v288_v1, %v187_v12  ;;  %v200_v23 = vadd.f32 %v288_v1, %v188_v13 }
  0x13   : > { %203 = vst [vmem:[%s170_s24] sm:$0xff] %v195_v16  ;;  %v201_v24 = vadd.f32 %v288_v1, %v189_v19 }
  0x14   : > { %204 = vst [vmem:[%s170_s24 + $0x8] sm:$0xff] %v196_v17  ;;  %v202_v25 = vadd.f32 %v288_v1, %v190_v21 }
  0x15   : > { %205 = vst [vmem:[%s170_s24 + $0x10] sm:$0xff] %v197_v18 }
  0x16   : > { %206 = vst [vmem:[%s170_s24 + $0x18] sm:$0xff] %v198_v20 }
  0x17   : > { %207 = vst [vmem:[%s170_s24 + $0x20] sm:$0xff] %v199_v22 }
  0x18   : > { %208 = vst [vmem:[%s170_s24 + $0x28] sm:$0xff] %v200_v23 }
  0x19   : > { %209 = vst [vmem:[%s170_s24 + $0x30] sm:$0xff] %v201_v24 }
  0x1a   : > { %210 = vst [vmem:[%s170_s24 + $0x38] sm:$0xff] %v202_v25 }
  0x1b PF: > { %s13_s12 = sadd.s32 1, %s295_s12  }
  0x1c   : > { %p10_p4 = scmp.ge.s32.totalorder %s13_s12, 4  }
  0x1e   :  { %12 = sbr.rel (!%p10_p4) target bundleno = 1 (0x1), region = 62 }

</bundles_post_ra>
